<compile_context>
chip_gen: v5e
topology: v5e:2x2
jax: 0.10.0
libtpu: 0.0.40
codegen_flags: <defaults>
</compile_context>

<pallas_src>
import jax
import jax.numpy as jnp
from jax import lax
from jax.experimental import pallas as pl
from jax.experimental.pallas import tpu as pltpu

NEG_SLOPE = 0.2      # LeakyReLU slope used by ConvSC
GN_GROUPS = 2        # nn.GroupNorm(2, C)
GN_EPS = 1e-5


def stride_generator(N, reverse=False):
    strides = [1, 2] * 10
    if reverse:
        return list(reversed(strides[:N]))
    return strides[:N]


# ----------------------------------------------------------------------------
# In-kernel helpers (traced inline inside the Pallas kernels).
# ----------------------------------------------------------------------------
def _tile_lanes(v, n):
    """Repeat a (1, C) row n times along the lane axis -> (1, n*C)."""
    return v if n == 1 else jnp.concatenate([v] * n, axis=1)


def _fill_pad_scratch(xpad_ref, x, top, bottom, left, right):
    """Write x into the interior of a persistent VMEM padded scratch.

    Border strips are zeroed every step (O(H+W) work, and correct even when
    the batch grid axis is split across TensorCores, unlike a pl.when(b==0)
    one-shot init).  The interior write is a single strided store — no
    concatenate-based full-tensor padding copies.
    """
    H, W, C = x.shape
    Hp, Wp = H + top + bottom, W + left + right
    zrow = jnp.zeros((1, Wp, C), x.dtype)
    zcol = jnp.zeros((Hp, 1, C), x.dtype)
    if top:
        xpad_ref[0:1, :, :] = zrow
    if bottom:
        xpad_ref[Hp - 1:Hp, :, :] = zrow
    if left:
        xpad_ref[:, 0:1, :] = zcol
    if right:
        xpad_ref[:, Wp - 1:Wp, :] = zcol
    xpad_ref[top:top + H, left:left + W, :] = x


def _conv3x3_acc(xpad_ref, w_ref, H, W, C):
    """3x3 conv from a (H+2, W+2, C) bf16 padded scratch -> (H*W, C) f32.

    ky-chunked im2col: 3 matmuls of (HW, 3C) @ (3C, C), f32 accumulation.
    Never materializes the full (HW, 9C) patch tensor.
    """
    acc = None
    for ky in range(3):
        rows = xpad_ref[ky:ky + H, :, :]                        # (H, W+2, C) bf16
        patch = jnp.concatenate(
            [rows[:, kx:kx + W, :].reshape(H * W, C) for kx in range(3)],
            axis=1)                                             # (HW, 3C) bf16
        part = jnp.dot(patch, w_ref[ky], preferred_element_type=jnp.float32)
        acc = part if acc is None else acc + part
    return acc


def _gn_lrelu(acc, gamma, beta, n_phase):
    """GroupNorm(2) + LeakyReLU(0.2) on acc: (N, n_phase*C) f32.

    Column block p holds output phase p of the same C channels; stats are
    accumulated per channel across all phases (== all output pixels).
    gamma / beta: (1, C) f32.

    NOTE precision contract: variance uses the one-pass E[x^2] - m^2 form in
    f32 (guarded by max(v, 0)); adequate at these magnitudes / tolerances.
    """
    N = acc.shape[0]
    C = acc.shape[1] // n_phase
    cg = C // GN_GROUPS
    s1 = jnp.sum(acc, axis=0, keepdims=True)                    # (1, n_phase*C)
    s2 = jnp.sum(acc * acc, axis=0, keepdims=True)
    sum_c = jnp.zeros((1, C), jnp.float32)
    ssq_c = jnp.zeros((1, C), jnp.float32)
    for p in range(n_phase):
        sum_c = sum_c + s1[:, p * C:(p + 1) * C]
        ssq_c = ssq_c + s2[:, p * C:(p + 1) * C]
    n_elems = float(N * n_phase * cg)
    ch = lax.broadcasted_iota(jnp.int32, (1, C), 1)
    scale = jnp.zeros((1, C), jnp.float32)
    shift = jnp.zeros((1, C), jnp.float32)
    for g in range(GN_GROUPS):
        m = jnp.sum(sum_c[:, g * cg:(g + 1) * cg]) / n_elems
        v = jnp.sum(ssq_c[:, g * cg:(g + 1) * cg]) / n_elems - m * m
        r = lax.rsqrt(jnp.maximum(v, 0.0) + GN_EPS)
        in_g = (ch >= g * cg) & (ch < (g + 1) * cg)
        scale = jnp.where(in_g, r, scale)
        shift = jnp.where(in_g, -m * r, shift)
    a = _tile_lanes(scale * gamma, n_phase)
    b = _tile_lanes(shift * gamma + beta, n_phase)
    y = acc * a + b
    return jnp.where(y > 0, y, NEG_SLOPE * y)


# ----------------------------------------------------------------------------
# Pallas kernels (one batch element per grid step)
# ----------------------------------------------------------------------------
def _convsc_s1_kernel(x_ref, w_ref, gbb_ref, o_ref, xpad_ref):
    """stride-1 ConvSC: 3x3 conv (pad 1) + GroupNorm(2) + LeakyReLU(0.2)."""
    H, W, C = x_ref.shape[1], x_ref.shape[2], x_ref.shape[3]
    _fill_pad_scratch(xpad_ref, x_ref[0], 1, 1, 1, 1)
    acc = _conv3x3_acc(xpad_ref, w_ref, H, W, C) + gbb_ref[0:1, :]
    y = _gn_lrelu(acc, gbb_ref[1:2, :], gbb_ref[2:3, :], 1)     # (HW, C) f32
    o_ref[0] = y.reshape(H, W, C).astype(o_ref.dtype)


def _convsc_up_kernel(x_ref, w_ref, gbb_ref, o_ref, xpad_ref):
    """stride-2 ConvSC (ConvTranspose2d k3 s2 p1 op1) via sub-pixel phases.

    Two chunked matmuls on the UNdilated input produce the 4 output phases:
      out[2y+dy, 2x+dx] = phase[dy,dx][y, x].
    """
    H, W, C = x_ref.shape[1], x_ref.shape[2], x_ref.shape[3]
    _fill_pad_scratch(xpad_ref, x_ref[0], 0, 1, 0, 1)           # (H+1, W+1, C)
    acc = None
    for ky in range(2):
        rows = xpad_ref[ky:ky + H, :, :]                        # (H, W+1, C) bf16
        patch = jnp.concatenate(
            [rows[:, 0:W, :].reshape(H * W, C),
             rows[:, 1:W + 1, :].reshape(H * W, C)], axis=1)    # (HW, 2C)
        part = jnp.dot(patch, w_ref[ky], preferred_element_type=jnp.float32)
        acc = part if acc is None else acc + part               # (HW, 4C) f32
    acc = acc + _tile_lanes(gbb_ref[0:1, :], 4)
    y = _gn_lrelu(acc, gbb_ref[1:2, :], gbb_ref[2:3, :], 4)     # (HW, 4C) f32

    # Pixel-shuffle the 4 phases.  Column layout is [p00|p01|p10|p11], so the
    # dx (column) interleave is already the memory order of each dy half — a
    # pure reshape.  Only the dy (row) interleave needs one concat.
    y = y.astype(o_ref.dtype)
    r_even = y[:, 0:2 * C].reshape(H, 2 * W, C)                 # output rows 2y
    r_odd = y[:, 2 * C:4 * C].reshape(H, 2 * W, C)              # output rows 2y+1
    out = jnp.concatenate([r_even[:, None, :, :], r_odd[:, None, :, :]], axis=1)
    o_ref[0] = out.reshape(2 * H, 2 * W, C)


def _convsc_last_kernel(h_ref, e_ref, w_ref, gbb_ref, wr_ref, br_ref,
                        o_ref, xpad_ref):
    """(hid + enc1) -> stride-1 ConvSC -> 1x1 readout, all fused.

    Output is written lane-dense as (Co, H*W) (NCHW after a free reshape).
    """
    H, W, C = h_ref.shape[1], h_ref.shape[2], h_ref.shape[3]
    x = (h_ref[0].astype(jnp.float32)
         + e_ref[0].astype(jnp.float32)).astype(jnp.bfloat16)   # skip add
    _fill_pad_scratch(xpad_ref, x, 1, 1, 1, 1)
    acc = _conv3x3_acc(xpad_ref, w_ref, H, W, C) + gbb_ref[0:1, :]
    y = _gn_lrelu(acc, gbb_ref[1:2, :], gbb_ref[2:3, :], 1)     # (HW, C) f32
    out = jnp.dot(y.astype(jnp.bfloat16), wr_ref[...],
                  preferred_element_type=jnp.float32) + br_ref[...]  # (HW, Co)
    o_ref[0] = jnp.transpose(out, (1, 0)).astype(o_ref.dtype)   # (Co, HW) lane-dense


# ----------------------------------------------------------------------------
# pallas_call wrappers
# ----------------------------------------------------------------------------
def _compiler_params(est_bytes):
    """dimension_semantics + an explicit VMEM limit sized from the footprint.

    Clamped to 64 MiB so the same setting is legal on v7x as well as v5e/v6e.
    """
    vmem = int(min(max(est_bytes, 8 << 20), 64 << 20))
    return pltpu.CompilerParams(dimension_semantics=("parallel",),
                                vmem_limit_bytes=vmem)


def convsc_s1(x, lyr):
    B, H, W, C = x.shape
    est = (2 * 2 * (H * W * C * 2)                 # in/out blocks, double-buffered bf16
           + (H + 2) * (W + 2) * C * 2             # padded scratch (bf16)
           + H * W * 3 * C * 2                     # ky-chunk im2col patch (bf16)
           + 2 * H * W * C * 4                     # f32 acc + normalized y
           + 9 * C * C * 2 * 2 + (2 << 20))        # weights + slack
    return pl.pallas_call(
        _convsc_s1_kernel,
        out_shape=jax.ShapeDtypeStruct((B, H, W, C), jnp.bfloat16),
        grid=(B,),
        in_specs=[pl.BlockSpec((1, H, W, C), lambda b: (b, 0, 0, 0)),
                  pl.BlockSpec((3, 3 * C, C), lambda b: (0, 0, 0)),
                  pl.BlockSpec((3, C), lambda b: (0, 0))],      # [bias; gamma; beta]
        out_specs=pl.BlockSpec((1, H, W, C), lambda b: (b, 0, 0, 0)),
        scratch_shapes=[pltpu.VMEM((H + 2, W + 2, C), jnp.bfloat16)],
        compiler_params=_compiler_params(est),
    )(x, lyr["w_ky"], lyr["gbb"])


def convsc_up(x, lyr):
    B, H, W, C = x.shape
    est = (2 * (H * W * C * 2 + 4 * H * W * C * 2) # in + out blocks, double-buffered
           + (H + 1) * (W + 1) * C * 2             # padded scratch
           + H * W * 2 * C * 2                     # chunk patch (bf16)
           + 2 * H * W * 4 * C * 4                 # f32 acc + y
           + 2 * H * W * 4 * C * 2                 # bf16 interleave copies
           + 16 * C * C * 2 * 2 + (2 << 20))       # weights + slack
    return pl.pallas_call(
        _convsc_up_kernel,
        out_shape=jax.ShapeDtypeStruct((B, 2 * H, 2 * W, C), jnp.bfloat16),
        grid=(B,),
        in_specs=[pl.BlockSpec((1, H, W, C), lambda b: (b, 0, 0, 0)),
                  pl.BlockSpec((2, 2 * C, 4 * C), lambda b: (0, 0, 0)),
                  pl.BlockSpec((3, C), lambda b: (0, 0))],
        out_specs=pl.BlockSpec((1, 2 * H, 2 * W, C), lambda b: (b, 0, 0, 0)),
        scratch_shapes=[pltpu.VMEM((H + 1, W + 1, C), jnp.bfloat16)],
        compiler_params=_compiler_params(est),
    )(x, lyr["w_ky"], lyr["gbb"])


def convsc_last(hid, enc1, lyr, ro):
    B, H, W, C = hid.shape
    Co = ro["w"].shape[1]
    est = (2 * 2 * (H * W * C * 2)                 # hid + enc1 blocks (bf16)
           + 2 * H * W * Co * 4                    # out block (f32), double-buffered
           + (H + 2) * (W + 2) * C * 2
           + H * W * 3 * C * 2
           + 2 * H * W * C * 4
           + 2 * H * W * Co * 4
           + 9 * C * C * 2 * 2 + (2 << 20))
    return pl.pallas_call(
        _convsc_last_kernel,
        out_shape=jax.ShapeDtypeStruct((B, Co, H * W), jnp.float32),
        grid=(B,),
        in_specs=[pl.BlockSpec((1, H, W, C), lambda b: (b, 0, 0, 0)),
                  pl.BlockSpec((1, H, W, C), lambda b: (b, 0, 0, 0)),
                  pl.BlockSpec((3, 3 * C, C), lambda b: (0, 0, 0)),
                  pl.BlockSpec((3, C), lambda b: (0, 0)),
                  pl.BlockSpec((C, Co), lambda b: (0, 0)),
                  pl.BlockSpec((1, Co), lambda b: (0, 0))],
        out_specs=pl.BlockSpec((1, Co, H * W), lambda b: (b, 0, 0)),
        scratch_shapes=[pltpu.VMEM((H + 2, W + 2, C), jnp.bfloat16)],
        compiler_params=_compiler_params(est),
    )(hid, enc1, lyr["w_ky"], lyr["gbb"], ro["w_bf"], ro["b"])


# ----------------------------------------------------------------------------
# Parameter setup + forward (glue in plain JAX)
# ----------------------------------------------------------------------------
def _pack_subpixel_weight(w9):
    """Build the (4C, 4C) sub-pixel block weight from w9 (3,3,Ci,Co) taps of
    the stride-1 conv equivalent to ConvTranspose2d(3, 2, 1, output_padding=1).

    Row blocks (inputs):  0 -> x[y,x], 1 -> x[y,x+1], 2 -> x[y+1,x], 3 -> x[y+1,x+1]
    Col blocks (phases):  0 -> (dy=0,dx=0), 1 -> (0,1), 2 -> (1,0), 3 -> (1,1)
    """
    C = w9.shape[2]
    Wb = jnp.zeros((4 * C, 4 * C), w9.dtype)
    taps = {
        0: [(0, w9[1, 1])],                                       # phase (0,0)
        1: [(0, w9[1, 0]), (1, w9[1, 2])],                        # phase (0,1)
        2: [(0, w9[0, 1]), (2, w9[2, 1])],                        # phase (1,0)
        3: [(0, w9[0, 0]), (1, w9[0, 2]), (2, w9[2, 0]), (3, w9[2, 2])],
    }
    for col, entries in taps.items():
        for row, tap in entries:
            Wb = Wb.at[row * C:(row + 1) * C, col * C:(col + 1) * C].set(tap)
    return Wb


def init_decoder_params(key, C_in, C_out, N_S):
    strides = stride_generator(N_S, reverse=True)
    assert strides[-1] == 1          # last Decoder layer is always stride 1
    keys = jax.random.split(key, 4 * len(strides) + 2)
    layers = []
    ki = 0
    C = C_in
    for s in strides:
        wk, bk, gk, ek = keys[ki:ki + 4]
        ki += 4
        if s == 2:
            # ConvTranspose2d weight (Ci, Co, 3, 3): the equivalent stride-1
            # conv uses the spatially flipped kernel, indexed [ky, kx, Ci, Co].
            wt = jax.random.normal(wk, (C, C, 3, 3), jnp.float32) * 0.15
            w9 = jnp.transpose(jnp.flip(wt, axis=(2, 3)), (2, 3, 0, 1))
        else:
            # Conv2d weight (Co, Ci, 3, 3) -> [ky, kx, Ci, Co].
            wc = jax.random.normal(wk, (C, C, 3, 3), jnp.float32) * 0.15
            w9 = jnp.transpose(wc, (2, 3, 1, 0))
        b = jax.random.normal(bk, (1, C), jnp.float32) * 0.05
        gamma = 1.0 + 0.1 * jax.random.normal(gk, (1, C), jnp.float32)
        beta = 0.05 * jax.random.normal(ek, (1, C), jnp.float32)
        lyr = dict(stride=s, w9=w9, b=b, gamma=gamma, beta=beta,
                   gbb=jnp.concatenate([b, gamma, beta], axis=0))   # (3, C) packed
        w9_bf = w9.astype(jnp.bfloat16)                      # bf16 MXU operands
        if s == 2:
            # (4C, 4C) -> (2, 2C, 4C): chunk 0 = rows {x[y,x], x[y,x+1]},
            # chunk 1 = rows {x[y+1,x], x[y+1,x+1]}.
            lyr["w_ky"] = _pack_subpixel_weight(w9_bf).reshape(2, 2 * C, 4 * C)
        else:
            lyr["w_ky"] = w9_bf.reshape(3, 3 * C, C)         # ky-chunked (3, 3C, C)
        layers.append(lyr)
    wr = jax.random.normal(keys[ki], (C_out, C, 1, 1), jnp.float32) * 0.15
    br = jax.random.normal(keys[ki + 1], (1, C_out), jnp.float32) * 0.05
    w_ro = jnp.transpose(wr[:, :, 0, 0], (1, 0))             # (C, Co)
    readout = dict(w=w_ro, w_bf=w_ro.astype(jnp.bfloat16), b=br)
    return dict(layers=layers, readout=readout)


def decoder_forward(params, hid_nchw, enc1_nchw):
    # TODO(synk): accept NHWC/bf16 upstream (or fold this transpose+cast into
    # the first kernel) to remove these two extra HBM passes.
    hid = jnp.transpose(hid_nchw, (0, 2, 3, 1)).astype(jnp.bfloat16)    # NHWC bf16
    enc1 = jnp.transpose(enc1_nchw, (0, 2, 3, 1)).astype(jnp.bfloat16)  # NHWC bf16
    layers = params["layers"]
    for lyr in layers[:-1]:
        hid = convsc_up(hid, lyr) if lyr["stride"] == 2 else convsc_s1(hid, lyr)
    y = convsc_last(hid, enc1, layers[-1], params["readout"])           # (B, Co, H*W)
    B, Ho, Wo, _ = hid.shape
    return y.reshape(B, y.shape[1], Ho, Wo)      # already NCHW; reshape is free


# ----------------------------------------------------------------------------
# Pure-JAX reference (same bf16 rounding points; checks the Pallas kernels,
# including the sub-pixel decomposition against the dilated-conv formulation)
# ----------------------------------------------------------------------------
def _convsc_ref(x_bf, lyr):
    w = lyr["w9"].astype(jnp.bfloat16).astype(jnp.float32)
    x = x_bf.astype(jnp.float32)
    if lyr["stride"] == 2:
        B, H, W, C = x.shape
        xd = jnp.zeros((B, 2 * H - 1, 2 * W - 1, C), jnp.float32)
        xd = xd.at[:, ::2, ::2, :].set(x)
        xp = jnp.pad(xd, ((0, 0), (1, 2), (1, 2), (0, 0)))
    else:
        xp = jnp.pad(x, ((0, 0), (1, 1), (1, 1), (0, 0)))
    y = lax.conv_general_dilated(xp, w, (1, 1), "VALID",
                                 dimension_numbers=("NHWC", "HWIO", "NHWC"))
    y = y + lyr["b"][0]
    B, Ho, Wo, C = y.shape
    yg = y.reshape(B, Ho * Wo, GN_GROUPS, C // GN_GROUPS)
    m = jnp.mean(yg, axis=(1, 3), keepdims=True)
    v = jnp.mean((yg - m) ** 2, axis=(1, 3), keepdims=True)
    yn = ((yg - m) * lax.rsqrt(v + GN_EPS)).reshape(B, Ho, Wo, C)
    yn = yn * lyr["gamma"][0] + lyr["beta"][0]
    return jnp.where(yn > 0, yn, NEG_SLOPE * yn)


def decoder_forward_ref(params, hid_nchw, enc1_nchw):
    hid = jnp.transpose(hid_nchw, (0, 2, 3, 1)).astype(jnp.bfloat16)
    enc1 = jnp.transpose(enc1_nchw, (0, 2, 3, 1)).astype(jnp.bfloat16)
    layers = params["layers"]
    for lyr in layers[:-1]:
        hid = _convsc_ref(hid, lyr).astype(jnp.bfloat16)   # bf16 inter-layer store
    skip = (hid.astype(jnp.float32) + enc1.astype(jnp.float32)).astype(jnp.bfloat16)
    y = _convsc_ref(skip, layers[-1])
    yq = y.astype(jnp.bfloat16).astype(jnp.float32)
    wr = params["readout"]["w"].astype(jnp.bfloat16).astype(jnp.float32)
    out = jnp.einsum("bhwc,co->bhwo", yq, wr) + params["readout"]["b"][0]
    return jnp.transpose(out, (0, 3, 1, 2))


if __name__ == "__main__":
    key = jax.random.PRNGKey(0)
    B, C_in, C_out, N_S = 2, 8, 3, 3
    H = W = 8                        # hid spatial; the stride-2 layer doubles it

    k_hid, k_enc, k_par = jax.random.split(key, 3)
    hid = jax.random.normal(k_hid, (B, C_in, H, W), jnp.float32)
    enc1 = jax.random.normal(k_enc, (B, C_in, 2 * H, 2 * W), jnp.float32)
    params = init_decoder_params(k_par, C_in, C_out, N_S)

    out = jax.block_until_ready(decoder_forward(params, hid, enc1))
    assert out.shape == (B, C_out, 2 * H, 2 * W), out.shape

    ref = decoder_forward_ref(params, hid, enc1)
    err = float(jnp.max(jnp.abs(out - ref)))
    assert jnp.allclose(out, ref, atol=2e-2, rtol=2e-2), err

    print("KERNEL_OK")
</pallas_src>

<mosaic_0001>
module attributes {stable_mosaic.version = 11 : i64} {
  func.func @_convsc_s1_kernel(%arg0: i32, %arg1: memref<1x8x8x8xbf16, #tpu.memory_space<vmem>>, %arg2: memref<3x24x8xbf16, #tpu.memory_space<vmem>>, %arg3: memref<3x8xf32, #tpu.memory_space<vmem>>, %arg4: memref<1x8x8x8xbf16, #tpu.memory_space<vmem>>, %arg5: memref<10x10x8xbf16, #tpu.memory_space<vmem>>) attributes {dimension_semantics = [#tpu.dimension_semantics<parallel>], iteration_bounds = array<i64: 2>, scalar_prefetch = 0 : i64, scratch_operands = 1 : i64, tpu.core_type = #tpu.core_type<tc>, window_params = [{transform_indices = @transform_0, window_bounds = array<i64: 1, 8, 8, 8>}, {pipeline_mode = #tpu.pipeline_mode<synchronous>, transform_indices = @transform_1, window_bounds = array<i64: 3, 24, 8>}, {pipeline_mode = #tpu.pipeline_mode<synchronous>, transform_indices = @transform_2, window_bounds = array<i64: 3, 8>}, {transform_indices = @transform_3, window_bounds = array<i64: 1, 8, 8, 8>}]} {
    %c0 = arith.constant 0 : index
    %c0_0 = arith.constant 0 : index
    %c0_1 = arith.constant 0 : index
    %c0_2 = arith.constant 0 : index
    %0 = vector.load %arg1[%c0, %c0_0, %c0_1, %c0_2] : memref<1x8x8x8xbf16, #tpu.memory_space<vmem>>, vector<1x8x8x8xbf16>
    %1 = vector.shape_cast %0 : vector<1x8x8x8xbf16> to vector<8x8x8xbf16>
    %cst = arith.constant 0.000000e+00 : bf16
    %2 = vector.broadcast %cst : bf16 to vector<1x10x8xbf16>
    %cst_3 = arith.constant 0.000000e+00 : bf16
    %3 = vector.broadcast %cst_3 : bf16 to vector<10x1x8xbf16>
    %c0_4 = arith.constant 0 : index
    %c0_5 = arith.constant 0 : index
    %c0_6 = arith.constant 0 : index
    %4 = vector.load %arg5[%c0_4, %c0_5, %c0_6] : memref<10x10x8xbf16, #tpu.memory_space<vmem>>, vector<1x10x8xbf16>
    tpu.vector_store %arg5[%c0_4, %c0_5, %c0_6], %2 {strides = array<i32>} : memref<10x10x8xbf16, #tpu.memory_space<vmem>>, vector<1x10x8xbf16>,
    %c9 = arith.constant 9 : index
    %c0_7 = arith.constant 0 : index
    %c0_8 = arith.constant 0 : index
    %5 = vector.load %arg5[%c9, %c0_7, %c0_8] : memref<10x10x8xbf16, #tpu.memory_space<vmem>>, vector<1x10x8xbf16>
    tpu.vector_store %arg5[%c9, %c0_7, %c0_8], %2 {strides = array<i32>} : memref<10x10x8xbf16, #tpu.memory_space<vmem>>, vector<1x10x8xbf16>,
    %c0_9 = arith.constant 0 : index
    %c0_10 = arith.constant 0 : index
    %c0_11 = arith.constant 0 : index
    %6 = vector.load %arg5[%c0_9, %c0_10, %c0_11] : memref<10x10x8xbf16, #tpu.memory_space<vmem>>, vector<10x1x8xbf16>
    tpu.vector_store %arg5[%c0_9, %c0_10, %c0_11], %3 {strides = array<i32>} : memref<10x10x8xbf16, #tpu.memory_space<vmem>>, vector<10x1x8xbf16>,
    %c0_12 = arith.constant 0 : index
    %c9_13 = arith.constant 9 : index
    %c0_14 = arith.constant 0 : index
    %7 = vector.load %arg5[%c0_12, %c9_13, %c0_14] : memref<10x10x8xbf16, #tpu.memory_space<vmem>>, vector<10x1x8xbf16>
    tpu.vector_store %arg5[%c0_12, %c9_13, %c0_14], %3 {strides = array<i32>} : memref<10x10x8xbf16, #tpu.memory_space<vmem>>, vector<10x1x8xbf16>,
    %c1 = arith.constant 1 : index
    %c1_15 = arith.constant 1 : index
    %c0_16 = arith.constant 0 : index
    %8 = vector.load %arg5[%c1, %c1_15, %c0_16] : memref<10x10x8xbf16, #tpu.memory_space<vmem>>, vector<8x8x8xbf16>
    tpu.vector_store %arg5[%c1, %c1_15, %c0_16], %1 {strides = array<i32>} : memref<10x10x8xbf16, #tpu.memory_space<vmem>>, vector<8x8x8xbf16>,
    %c0_17 = arith.constant 0 : index
    %c0_18 = arith.constant 0 : index
    %c0_19 = arith.constant 0 : index
    %9 = vector.load %arg5[%c0_17, %c0_18, %c0_19] : memref<10x10x8xbf16, #tpu.memory_space<vmem>>, vector<8x10x8xbf16>
    %10 = vector.extract_strided_slice %9 {offsets = [0, 0, 0], sizes = [8, 8, 8], strides = [1, 1, 1]} : vector<8x10x8xbf16> to vector<8x8x8xbf16>
    %11 = vector.shape_cast %10 : vector<8x8x8xbf16> to vector<64x8xbf16>
    %12 = vector.extract_strided_slice %9 {offsets = [0, 1, 0], sizes = [8, 8, 8], strides = [1, 1, 1]} : vector<8x10x8xbf16> to vector<8x8x8xbf16>
    %13 = vector.shape_cast %12 : vector<8x8x8xbf16> to vector<64x8xbf16>
    %14 = vector.extract_strided_slice %9 {offsets = [0, 2, 0], sizes = [8, 8, 8], strides = [1, 1, 1]} : vector<8x10x8xbf16> to vector<8x8x8xbf16>
    %15 = vector.shape_cast %14 : vector<8x8x8xbf16> to vector<64x8xbf16>
    %16 = tpu.concatenate %11, %13, %15 in 1 : vector<64x8xbf16>, vector<64x8xbf16>, vector<64x8xbf16> -> vector<64x24xbf16>
    %c0_20 = arith.constant 0 : index
    %c0_21 = arith.constant 0 : index
    %c0_22 = arith.constant 0 : index
    %17 = vector.load %arg2[%c0_20, %c0_21, %c0_22] : memref<3x24x8xbf16, #tpu.memory_space<vmem>>, vector<1x24x8xbf16>
    %18 = vector.shape_cast %17 : vector<1x24x8xbf16> to vector<24x8xbf16>
    %cst_23 = arith.constant dense<0.000000e+00> : vector<64x8xf32>
    %19 = tpu.matmul %16, %18, %cst_23 {dimension_numbers = #tpu.dot_dimension_numbers<[1], [0], [0], [1], [0, 0, 1, 1], [], []>} : vector<64x24xbf16>, vector<24x8xbf16>, vector<64x8xf32> -> vector<64x8xf32>
    %c1_24 = arith.constant 1 : index
    %c0_25 = arith.constant 0 : index
    %c0_26 = arith.constant 0 : index
    %20 = vector.load %arg5[%c1_24, %c0_25, %c0_26] : memref<10x10x8xbf16, #tpu.memory_space<vmem>>, vector<8x10x8xbf16>
    %21 = vector.extract_strided_slice %20 {offsets = [0, 0, 0], sizes = [8, 8, 8], strides = [1, 1, 1]} : vector<8x10x8xbf16> to vector<8x8x8xbf16>
    %22 = vector.shape_cast %21 : vector<8x8x8xbf16> to vector<64x8xbf16>
    %23 = vector.extract_strided_slice %20 {offsets = [0, 1, 0], sizes = [8, 8, 8], strides = [1, 1, 1]} : vector<8x10x8xbf16> to vector<8x8x8xbf16>
    %24 = vector.shape_cast %23 : vector<8x8x8xbf16> to vector<64x8xbf16>
    %25 = vector.extract_strided_slice %20 {offsets = [0, 2, 0], sizes = [8, 8, 8], strides = [1, 1, 1]} : vector<8x10x8xbf16> to vector<8x8x8xbf16>
    %26 = vector.shape_cast %25 : vector<8x8x8xbf16> to vector<64x8xbf16>
    %27 = tpu.concatenate %22, %24, %26 in 1 : vector<64x8xbf16>, vector<64x8xbf16>, vector<64x8xbf16> -> vector<64x24xbf16>
    %c1_27 = arith.constant 1 : index
    %c0_28 = arith.constant 0 : index
    %c0_29 = arith.constant 0 : index
    %28 = vector.load %arg2[%c1_27, %c0_28, %c0_29] : memref<3x24x8xbf16, #tpu.memory_space<vmem>>, vector<1x24x8xbf16>
    %29 = vector.shape_cast %28 : vector<1x24x8xbf16> to vector<24x8xbf16>
    %cst_30 = arith.constant dense<0.000000e+00> : vector<64x8xf32>
    %30 = tpu.matmul %27, %29, %cst_30 {dimension_numbers = #tpu.dot_dimension_numbers<[1], [0], [0], [1], [0, 0, 1, 1], [], []>} : vector<64x24xbf16>, vector<24x8xbf16>, vector<64x8xf32> -> vector<64x8xf32>
    %31 = arith.addf %19, %30 : vector<64x8xf32>
    %c2 = arith.constant 2 : index
    %c0_31 = arith.constant 0 : index
    %c0_32 = arith.constant 0 : index
    %32 = vector.load %arg5[%c2, %c0_31, %c0_32] : memref<10x10x8xbf16, #tpu.memory_space<vmem>>, vector<8x10x8xbf16>
    %33 = vector.extract_strided_slice %32 {offsets = [0, 0, 0], sizes = [8, 8, 8], strides = [1, 1, 1]} : vector<8x10x8xbf16> to vector<8x8x8xbf16>
    %34 = vector.shape_cast %33 : vector<8x8x8xbf16> to vector<64x8xbf16>
    %35 = vector.extract_strided_slice %32 {offsets = [0, 1, 0], sizes = [8, 8, 8], strides = [1, 1, 1]} : vector<8x10x8xbf16> to vector<8x8x8xbf16>
    %36 = vector.shape_cast %35 : vector<8x8x8xbf16> to vector<64x8xbf16>
    %37 = vector.extract_strided_slice %32 {offsets = [0, 2, 0], sizes = [8, 8, 8], strides = [1, 1, 1]} : vector<8x10x8xbf16> to vector<8x8x8xbf16>
    %38 = vector.shape_cast %37 : vector<8x8x8xbf16> to vector<64x8xbf16>
    %39 = tpu.concatenate %34, %36, %38 in 1 : vector<64x8xbf16>, vector<64x8xbf16>, vector<64x8xbf16> -> vector<64x24xbf16>
    %c2_33 = arith.constant 2 : index
    %c0_34 = arith.constant 0 : index
    %c0_35 = arith.constant 0 : index
    %40 = vector.load %arg2[%c2_33, %c0_34, %c0_35] : memref<3x24x8xbf16, #tpu.memory_space<vmem>>, vector<1x24x8xbf16>
    %41 = vector.shape_cast %40 : vector<1x24x8xbf16> to vector<24x8xbf16>
    %cst_36 = arith.constant dense<0.000000e+00> : vector<64x8xf32>
    %42 = tpu.matmul %39, %41, %cst_36 {dimension_numbers = #tpu.dot_dimension_numbers<[1], [0], [0], [1], [0, 0, 1, 1], [], []>} : vector<64x24xbf16>, vector<24x8xbf16>, vector<64x8xf32> -> vector<64x8xf32>
    %43 = arith.addf %31, %42 : vector<64x8xf32>
    %c0_37 = arith.constant 0 : index
    %c0_38 = arith.constant 0 : index
    %44 = vector.load %arg3[%c0_37, %c0_38] : memref<3x8xf32, #tpu.memory_space<vmem>>, vector<1x8xf32>
    %45 = vector.broadcast %44 : vector<1x8xf32> to vector<64x8xf32>
    %46 = arith.addf %43, %45 : vector<64x8xf32>
    %c1_39 = arith.constant 1 : index
    %c0_40 = arith.constant 0 : index
    %47 = vector.load %arg3[%c1_39, %c0_40] : memref<3x8xf32, #tpu.memory_space<vmem>>, vector<1x8xf32>
    %c2_41 = arith.constant 2 : index
    %c0_42 = arith.constant 0 : index
    %48 = vector.load %arg3[%c2_41, %c0_42] : memref<3x8xf32, #tpu.memory_space<vmem>>, vector<1x8xf32>
    %cst_43 = arith.constant dense<0.000000e+00> : vector<8xf32>
    %49 = vector.multi_reduction <add>, %46, %cst_43 [0] : vector<64x8xf32> to vector<8xf32>
    %50 = vector.shape_cast %49 : vector<8xf32> to vector<1x8xf32>
    %51 = arith.mulf %46, %46 : vector<64x8xf32>
    %cst_44 = arith.constant dense<0.000000e+00> : vector<8xf32>
    %52 = vector.multi_reduction <add>, %51, %cst_44 [0] : vector<64x8xf32> to vector<8xf32>
    %53 = vector.shape_cast %52 : vector<8xf32> to vector<1x8xf32>
    %cst_45 = arith.constant 0.000000e+00 : f32
    %54 = vector.broadcast %cst_45 : f32 to vector<1x8xf32>
    %cst_46 = arith.constant 0.000000e+00 : f32
    %55 = vector.broadcast %cst_46 : f32 to vector<1x8xf32>
    %56 = arith.addf %54, %50 : vector<1x8xf32>
    %57 = arith.addf %55, %53 : vector<1x8xf32>
    %58 = tpu.iota {dimensions = array<i32: 1>} : vector<1x8xi32>
    %cst_47 = arith.constant 0.000000e+00 : f32
    %59 = vector.broadcast %cst_47 : f32 to vector<1x8xf32>
    %cst_48 = arith.constant 0.000000e+00 : f32
    %60 = vector.broadcast %cst_48 : f32 to vector<1x8xf32>
    %61 = vector.extract_strided_slice %56 {offsets = [0, 0], sizes = [1, 4], strides = [1, 1]} : vector<1x8xf32> to vector<1x4xf32>
    %62 = vector.shape_cast %61 : vector<1x4xf32> to vector<1x1x4xf32>
    %cst_49 = arith.constant dense<0.000000e+00> : vector<1xf32>
    %63 = vector.multi_reduction <add>, %62, %cst_49 [1, 2] : vector<1x1x4xf32> to vector<1xf32>
    %64 = vector.shape_cast %63 : vector<1xf32> to vector<1x1x1xf32>
    %65 = vector.extract %64[0, 0, 0] : f32 from vector<1x1x1xf32>
    %cst_50 = arith.constant 2.560000e+02 : f32
    %66 = arith.divf %65, %cst_50 : f32
    %67 = vector.extract_strided_slice %57 {offsets = [0, 0], sizes = [1, 4], strides = [1, 1]} : vector<1x8xf32> to vector<1x4xf32>
    %68 = vector.shape_cast %67 : vector<1x4xf32> to vector<1x1x4xf32>
    %cst_51 = arith.constant dense<0.000000e+00> : vector<1xf32>
    %69 = vector.multi_reduction <add>, %68, %cst_51 [1, 2] : vector<1x1x4xf32> to vector<1xf32>
    %70 = vector.shape_cast %69 : vector<1xf32> to vector<1x1x1xf32>
    %71 = vector.extract %70[0, 0, 0] : f32 from vector<1x1x1xf32>
    %cst_52 = arith.constant 2.560000e+02 : f32
    %72 = arith.divf %71, %cst_52 : f32
    %73 = arith.mulf %66, %66 : f32
    %74 = arith.subf %72, %73 : f32
    %cst_53 = arith.constant 0.000000e+00 : f32
    %75 = arith.maximumf %74, %cst_53 : f32
    %cst_54 = arith.constant 9.99999974E-6 : f32
    %76 = arith.addf %75, %cst_54 : f32
    %77 = math.rsqrt %76 : f32
    %c0_i32 = arith.constant 0 : i32
    %78 = vector.broadcast %c0_i32 : i32 to vector<1x8xi32>
    %79 = arith.cmpi sge, %58, %78 : vector<1x8xi32>
    %c4_i32 = arith.constant 4 : i32
    %80 = vector.broadcast %c4_i32 : i32 to vector<1x8xi32>
    %81 = arith.cmpi slt, %58, %80 : vector<1x8xi32>
    %82 = arith.andi %79, %81 : vector<1x8xi1>
    %83 = vector.broadcast %77 : f32 to vector<1x8xf32>
    %84 = arith.select %82, %83, %59 : vector<1x8xi1>, vector<1x8xf32>
    %cst_55 = arith.constant 0.000000e+00 : f32
    %85 = arith.subf %cst_55, %66 : f32
    %86 = arith.mulf %85, %77 : f32
    %87 = vector.broadcast %86 : f32 to vector<1x8xf32>
    %88 = arith.select %82, %87, %60 : vector<1x8xi1>, vector<1x8xf32>
    %89 = vector.extract_strided_slice %56 {offsets = [0, 4], sizes = [1, 4], strides = [1, 1]} : vector<1x8xf32> to vector<1x4xf32>
    %90 = vector.shape_cast %89 : vector<1x4xf32> to vector<1x1x4xf32>
    %cst_56 = arith.constant dense<0.000000e+00> : vector<1xf32>
    %91 = vector.multi_reduction <add>, %90, %cst_56 [1, 2] : vector<1x1x4xf32> to vector<1xf32>
    %92 = vector.shape_cast %91 : vector<1xf32> to vector<1x1x1xf32>
    %93 = vector.extract %92[0, 0, 0] : f32 from vector<1x1x1xf32>
    %cst_57 = arith.constant 2.560000e+02 : f32
    %94 = arith.divf %93, %cst_57 : f32
    %95 = vector.extract_strided_slice %57 {offsets = [0, 4], sizes = [1, 4], strides = [1, 1]} : vector<1x8xf32> to vector<1x4xf32>
    %96 = vector.shape_cast %95 : vector<1x4xf32> to vector<1x1x4xf32>
    %cst_58 = arith.constant dense<0.000000e+00> : vector<1xf32>
    %97 = vector.multi_reduction <add>, %96, %cst_58 [1, 2] : vector<1x1x4xf32> to vector<1xf32>
    %98 = vector.shape_cast %97 : vector<1xf32> to vector<1x1x1xf32>
    %99 = vector.extract %98[0, 0, 0] : f32 from vector<1x1x1xf32>
    %cst_59 = arith.constant 2.560000e+02 : f32
    %100 = arith.divf %99, %cst_59 : f32
    %101 = arith.mulf %94, %94 : f32
    %102 = arith.subf %100, %101 : f32
    %cst_60 = arith.constant 0.000000e+00 : f32
    %103 = arith.maximumf %102, %cst_60 : f32
    %cst_61 = arith.constant 9.99999974E-6 : f32
    %104 = arith.addf %103, %cst_61 : f32
    %105 = math.rsqrt %104 : f32
    %c4_i32_62 = arith.constant 4 : i32
    %106 = vector.broadcast %c4_i32_62 : i32 to vector<1x8xi32>
    %107 = arith.cmpi sge, %58, %106 : vector<1x8xi32>
    %c8_i32 = arith.constant 8 : i32
    %108 = vector.broadcast %c8_i32 : i32 to vector<1x8xi32>
    %109 = arith.cmpi slt, %58, %108 : vector<1x8xi32>
    %110 = arith.andi %107, %109 : vector<1x8xi1>
    %111 = vector.broadcast %105 : f32 to vector<1x8xf32>
    %112 = arith.select %110, %111, %84 : vector<1x8xi1>, vector<1x8xf32>
    %cst_63 = arith.constant 0.000000e+00 : f32
    %113 = arith.subf %cst_63, %94 : f32
    %114 = arith.mulf %113, %105 : f32
    %115 = vector.broadcast %114 : f32 to vector<1x8xf32>
    %116 = arith.select %110, %115, %88 : vector<1x8xi1>, vector<1x8xf32>
    %117 = arith.mulf %112, %47 : vector<1x8xf32>
    %118 = arith.mulf %116, %47 : vector<1x8xf32>
    %119 = arith.addf %118, %48 : vector<1x8xf32>
    %120 = vector.broadcast %117 : vector<1x8xf32> to vector<64x8xf32>
    %121 = arith.mulf %46, %120 : vector<64x8xf32>
    %122 = vector.broadcast %119 : vector<1x8xf32> to vector<64x8xf32>
    %123 = arith.addf %121, %122 : vector<64x8xf32>
    %cst_64 = arith.constant 0.000000e+00 : f32
    %124 = vector.broadcast %cst_64 : f32 to vector<64x8xf32>
    %125 = arith.cmpf ogt, %123, %124 : vector<64x8xf32>
    %cst_65 = arith.constant 2.000000e-01 : f32
    %126 = vector.broadcast %cst_65 : f32 to vector<64x8xf32>
    %127 = arith.mulf %126, %123 : vector<64x8xf32>
    %128 = arith.select %125, %123, %127 : vector<64x8xi1>, vector<64x8xf32>
    %129 = vector.shape_cast %128 : vector<64x8xf32> to vector<8x8x8xf32>
    %130 = arith.truncf %129 : vector<8x8x8xf32> to vector<8x8x8xbf16>
    %c0_66 = arith.constant 0 : index
    %c0_67 = arith.constant 0 : index
    %c0_68 = arith.constant 0 : index
    %c0_69 = arith.constant 0 : index
    %131 = vector.load %arg4[%c0_66, %c0_67, %c0_68, %c0_69] : memref<1x8x8x8xbf16, #tpu.memory_space<vmem>>, vector<1x8x8x8xbf16>
    %132 = vector.shape_cast %131 : vector<1x8x8x8xbf16> to vector<8x8x8xbf16>
    %133 = vector.shape_cast %130 : vector<8x8x8xbf16> to vector<1x8x8x8xbf16>
    tpu.vector_store %arg4[%c0_66, %c0_67, %c0_68, %c0_69], %133 {strides = array<i32>} : memref<1x8x8x8xbf16, #tpu.memory_space<vmem>>, vector<1x8x8x8xbf16>,
    return
  }
  func.func @transform_0(%arg0: i32) -> (i32, i32, i32, i32) {
    %c0_i32 = arith.constant 0 : i32
    %c0_i32_0 = arith.constant 0 : i32
    %c0_i32_1 = arith.constant 0 : i32
    %c0_i32_2 = arith.constant 0 : i32
    return %arg0, %c0_i32, %c0_i32_0, %c0_i32_1 : i32, i32, i32, i32
  }
  func.func @transform_1(%arg0: i32) -> (i32, i32, i32) {
    %c0_i32 = arith.constant 0 : i32
    %c0_i32_0 = arith.constant 0 : i32
    %c0_i32_1 = arith.constant 0 : i32
    %c0_i32_2 = arith.constant 0 : i32
    return %c0_i32, %c0_i32_0, %c0_i32_1 : i32, i32, i32
  }
  func.func @transform_2(%arg0: i32) -> (i32, i32) {
    %c0_i32 = arith.constant 0 : i32
    %c0_i32_0 = arith.constant 0 : i32
    %c0_i32_1 = arith.constant 0 : i32
    return %c0_i32, %c0_i32_0 : i32, i32
  }
  func.func @transform_3(%arg0: i32) -> (i32, i32, i32, i32) {
    %c0_i32 = arith.constant 0 : i32
    %c0_i32_0 = arith.constant 0 : i32
    %c0_i32_1 = arith.constant 0 : i32
    %c0_i32_2 = arith.constant 0 : i32
    return %arg0, %c0_i32, %c0_i32_0, %c0_i32_1 : i32, i32, i32, i32
  }
}

</mosaic_0001>

<bundles_post_ra>
// kernel: tpu_custom_call.1
= control target key start
LH: loop header
LB: loop body
LE: loop exit
PB: predicated region body
PF: predicated region fallthrough
CT: control target
= control target key end

     0   :  { %8 = vsyncpa [#allocation4], 0  ;;  %s2791_s0 = inlined_call_operand.hbm [shape: bf16[2,8,8,8], index: 0, kind: input, shape index: {}]   ;;  %s2792_s1 = inlined_call_operand.vmem [shape: bf16[3,24,8], index: 1, kind: input, shape index: {}]   ;;  %s2793_s2 = inlined_call_operand.vmem [shape: f32[3,8], index: 2, kind: input, shape index: {}]   ;;  %s2794_s3 = inlined_call_operand.hbm [shape: bf16[2,8,8,8], index: 3, kind: output, shape index: {}]  }
   0x1   :  { %10 = vsyncpa [#allocation4 + $0x1], 0 }
   0x2   :  { %11 = vsyncpa [#allocation5], 0 }
   0x3   :  { %13 = vsyncpa [#allocation5 + $0x1], 0  ;;  %s2019_s12 = smov 0   ;;  %s2021_s13 = smov 0  }
   0x4   :  { %s2023_s14 = smov 0   ;;  %s2025_s15 = smov 0  }
   0x5 LB: > { %s2040_s16 = sadd.s32 4294967295, %s1987_s15   ;;  %s1675_s17 = sadd.s32 4294967294, %s1987_s15   ;;  %s1987_s15 = sphi %s2025_s15, %s2814_s15   ;;  %s1983_s14 = sphi %s2023_s14, %s2813_s14   ;;  %s1979_s13 = sphi %s2021_s13, %s2812_s13   ;;  %s1975_s12 = sphi %s2019_s12, %s2811_s12  }
   0x6   : > { %s2044_s18 = sadd.s32 1, %s1987_s15   ;;  %s26_s19 = sadd.s32 1, %s1983_s14 }
   0x7   : > { %s23_s20 = ssub.s32 %s1987_s15, %s2044_s18  ;;  %p33_p0 = scmp.ne.s32.totalorder %s1983_s14, %s1979_s13 }
   0x8   : > { %p24_p1 = scmp.eq.s32.totalorder %s23_s20, 0  ;;  %p34_p2 = scmp.eq.s32.totalorder %s1987_s15, 0 }
   0x9   : > { %p39_p3 = scmp.ne.s32.totalorder %s1979_s13, %s1975_s12  ;;  %p40_p4 = scmp.eq.s32.totalorder %s2040_s16, 0 }
   0xa   : > { %s2056_s21 = scalar_select %p24_p1, %s1983_s14, %s26_s19  }
   0xb   : > { %p2058_p5 = por %p34_p2, %p33_p0  ;;  %p2062_p6 = por %p40_p4, %p39_p3 }
   0xc   : > { %p105_p7 = scmp.eq.s32.totalorder %s2040_s16, 1  ;;  %p111_p8 = scmp.eq.s32.totalorder %s1675_s17, 1 }
   0xd   : > { %p1840_p10 = scmp.lt.s32.totalorder %s1987_s15, 2  ;;  %s137_s26 = sand.u32 1, %s1983_s14  }
   0xe   : > { %p2069_p11 = por %p105_p7, %p33_p0  ;;  %p2073_p12 = por %p111_p8, %p39_p3 }
   0xf   : > { %s1791_s27 = sshll.u32 %s1987_s15, 5  ;;  %s1678_s28 = sshll.u32 %s137_s26, 5 }
  0x10   : > { %s146_s4 = scalar_lea.hbm %s2791_s0, %s1791_s27  ;;  %s141_s6 = scalar_lea.vmem [#allocation3], %s1678_s28 }
  0x11   : > { %s147_s5 = sshll.u32 %s146_s4, 4  ;;  %s149_s7 = sshll.u32 %s141_s6, 4  ;;  %s148_s5 = int_to_ptr.hbm [resolvable:$true] %s147_s5  ;;  %s150_s7 = int_to_ptr.vmem [resolvable:$true] %s149_s7 }
  0x12   : > { %p2084_p13 = pnand %p1840_p10, %p2058_p5  ;;  %p1681_p0 = scmp.ge.s32.totalorder %s1987_s15, 1 }
  0x13   : > { %p157_p1 = scmp.lt.s32.totalorder %s1987_s15, 3  ;;  %s138_s9 = scalar_lea.sflag [#allocation4], %s137_s26 }
  0x14   : > { %s1891_s10 = sshra.s32 %s148_s5, 4  ;;  %p1895_p3 = pneg %p2084_p13  ;;  %s1892_s10 = int_to_ptr.hbm [resolvable:$true] %s1891_s10 }
  0x15   : > { %s1893_s11 = scalar_lea.hbm %s1892_s10, 32  ;;  %s1898_s20 = scalar_lea.hbm %s2791_s0, 64 }
  0x16   : > { %p1894_p2 = scmp.ne.s32.totalorder %s1892_s10, %s1893_s11  ;;  %p1899_p5 = scmp.lt.s32.totalorder %s1892_s10, %s2791_s0 }
  0x17   : > { %p1900_p8 = scmp.lt.s32.totalorder %s1898_s20, %s1893_s11 }
  0x18   : > { %p1896_p4 = pnand %p1895_p3, %p1894_p2 }
  0x19   : > { %p1901_p10 = por %p1900_p8, %p1899_p5 }
  0x1a   : > { %p1897_p7 = pneg %p1896_p4 }
  0x1c   : > { %p1902_p9 = pnand %p1901_p10, %p1897_p7 }
  0x1e   : > { %1905 = shalt.err (!%p1902_p9)
}
  0x1f   : > { %s1989_s26 = smov 64   ;;  %s1990_s28 = smov 4  }
  0x20   : > { %1835 = dma.hbm_to_vmem [thread:$0]  (!%p2084_p13), %s148_s5, 512, %s150_s7, %s138_s9, %s1989_s26, %s1989_s26, %s1990_s28  }
  0x21   : > { %p158_p2 = pnand %p1681_p0, %p157_p1 }
  0x22   : > { %s2105_s29 = sand.u32 (!%p158_p2), 1, %s1979_s13  }
  0x23   : > { %161 = sbr.rel (%p158_p2) target bundleno = 827 (0x33b), region = 32  ;;  %s1682_s30 = sshll.u32 (!%p158_p2), %s2105_s29, 5 }
  0x24   : > { %s164_s4 = scalar_lea.sflag (!%p158_p2), [#allocation4], %s2105_s29  ;;  %s2111_s6 = scalar_lea.vmem (!%p158_p2), [#allocation3], %s1682_s30 }
  0x28   : > { %1966 = dma.done.wait (%p2062_p6), %s164_s4, 512  }
  0x29   : > { %1968 = vsyncadd (%p2062_p6), %s164_s4, 4294966784  ;;  %vm200_vm0 = vcmask 60416   ;;  %vm202_vm1 = vcmask 57344   ;;  %vm208_vm2 = vsmask.f32 256  ;;  %v1991_v0 = vmov 0  }
  0x2a   : > { %201 = vst.msk [vmem:[#allocation2] sm:$0xf] %vm200_vm0, %v1991_v0  ;;  %vm240_vm3 = vsmask.f32 7938  ;;  %vm2119_vm4 = vmand %vm202_vm1, %vm208_vm2  ;;  %v194_v3 = vld [vmem:[%s2111_s6 + $0x8] sm:$0xf] }
  0x2b   : > { %203 = vst.msk [vmem:[#allocation2 + $0x4] sm:$0x1] %vm202_vm1, %v1991_v0  ;;  %vm2124_vm5 = vmand %vm202_vm1, %vm240_vm3  ;;  %v195_v4 = vld [vmem:[%s2111_s6 + $0xc] sm:$0xf]  ;;  %v219_v5 = vld [vmem:[#allocation2 + $0x18] sm:$0x1] }
  0x2c   : > { %205 = vst.msk [vmem:[#allocation2 + $0x48] sm:$0xf] %vm200_vm0, %v1991_v0  ;;  %v220_v6 = vsel %vm2119_vm4, 0, %v219_v5  ;;  %v222_v7 = vld [vmem:[#allocation2 + $0x20] sm:$0x1]  ;;  %v289_v9 = vshrl.u32 %v194_v3, 16  ;;  %vm2142_vm6 = vmand %vm200_vm0, %vm240_vm3 }
  0x2d   : > { %206 = vst.msk [vmem:[#allocation2 + $0x4c] sm:$0x1] %vm202_vm1, %v1991_v0  ;;  %v251_v8 = vld [vmem:[#allocation2 + $0x1c] sm:$0x1]  ;;  %v223_v10 = vsel %vm2119_vm4, 0, %v222_v7  ;;  %v292_v15 = vshll.u32 %v194_v3, 16 }
  0x2e   : > { %221 = vst [vmem:[#allocation2 + $0x18] sm:$0x1] %v220_v6  ;;  %v252_v11 = vsel %vm2124_vm5, 0, %v251_v8  ;;  %v254_v12 = vld [vmem:[#allocation2 + $0x24] sm:$0x1]  ;;  %v291_v14 = vrot.slane %v289_v9, 7 }
  0x2f   : > { %224 = vst [vmem:[#allocation2 + $0x20] sm:$0x1] %v223_v10  ;;  %v255_v13 = vsel %vm2124_vm5, 0, %v254_v12  ;;  %v297_v16 = vshrl.u32 %v195_v4, 16  ;;  %v300_v17 = vshll.u32 %v195_v4, 16  ;;  %vm550_vm7 = vcmask 1042432  }
  0x30   : > { %253 = vst [vmem:[#allocation2 + $0x1c] sm:$0x1] %v252_v11  ;;  %v192_v18 = vld [vmem:[%s2111_s6] sm:$0xf]  ;;  %v193_v20 = vld [vmem:[%s2111_s6 + $0x4] sm:$0xf]  ;;  %v294_v21 = vor.u32 %v292_v15, %v291_v14 }
  0x31   : > { %256 = vst [vmem:[#allocation2 + $0x24] sm:$0x1] %v255_v13  ;;  %v299_v19 = vrot.slane %v297_v16, 7  ;;  %v213_v22 = vld [vmem:[#allocation2 + $0x8] sm:$0x1]  ;;  %v295_v25 = vrot.slane %v291_v14, 4 }
  0x32   : > { %v216_v23 = vld [vmem:[#allocation2 + $0x10] sm:$0x1]  ;;  %v245_v24 = vld [vmem:[#allocation2 + $0xc] sm:$0x1]  ;;  %v214_v28 = vsel %vm2119_vm4, 0, %v213_v22  ;;  %v273_v33 = vshrl.u32 %v192_v18, 16 }
  0x33   : > { %v302_v26 = vor.u32 %v300_v17, %v299_v19  ;;  %v217_v29 = vsel %vm2119_vm4, 0, %v216_v23  ;;  %v248_v30 = vld [vmem:[#allocation2 + $0x14] sm:$0x1]  ;;  %v303_v31 = vrot.slane %v299_v19, 4  ;;  %215 = vst [vmem:[#allocation2 + $0x8] sm:$0x1] %v214_v28 }
  0x34   : > { %v246_v32 = vsel %vm2124_vm5, 0, %v245_v24  ;;  %v276_v34 = vshll.u32 %v192_v18, 16  ;;  %218 = vst [vmem:[#allocation2 + $0x10] sm:$0x1] %v217_v29  ;;  %v281_v36 = vshrl.u32 %v193_v20, 16  ;;  %v284_v37 = vshll.u32 %v193_v20, 16 }
  0x35   : > { %v367_v35 = vld [vmem:[#allocation2 + $0x18] sm:$0xf]  ;;  %247 = vst [vmem:[#allocation2 + $0xc] sm:$0x1] %v246_v32  ;;  %v275_v40 = vrot.slane %v273_v33, 7  ;;  %v249_v46 = vsel %vm2124_vm5, 0, %v248_v30 }
  0x36   : > { %v368_v38 = vsel %vm2142_vm6, %v294_v21, %v367_v35  ;;  %v373_v39 = vld [vmem:[#allocation2 + $0x20] sm:$0xf]  ;;  %v283_v43 = vrot.slane %v281_v36, 7  ;;  %v225_v52 = vld [vmem:[#allocation2 + $0x28] sm:$0x1]  ;;  %vm551_vm8 = vcmask 1046532  }
  0x37   : > { %369 = vst [vmem:[#allocation2 + $0x18] sm:$0xf] %v368_v38  ;;  %v370_v41 = vld [vmem:[#allocation2 + $0x1c] sm:$0x1]  ;;  %v374_v42 = vsel %vm2142_vm6, %v302_v26, %v373_v39  ;;  %v278_v47 = vor.u32 %v276_v34, %v275_v40  ;;  %v279_v49 = vrot.slane %v275_v40, 4  ;;  %v226_v55 = vsel %vm2119_vm4, 0, %v225_v52  ;;  %vm2185_vm9 = vmor %vm550_vm7, %vm551_vm8 }
  0x38   : > { %v371_v44 = vsel %vm2119_vm4, %v295_v25, %v370_v41  ;;  %375 = vst [vmem:[#allocation2 + $0x20] sm:$0xf] %v374_v42  ;;  %v376_v45 = vld [vmem:[#allocation2 + $0x24] sm:$0x1]  ;;  %v286_v50 = vor.u32 %v284_v37, %v283_v43  ;;  %v196_v51 = vld [vmem:[%s2111_s6 + $0x10] sm:$0xf] }
  0x39   : > { %372 = vst [vmem:[#allocation2 + $0x1c] sm:$0x1] %v371_v44  ;;  %v377_v48 = vsel %vm2119_vm4, %v303_v31, %v376_v45  ;;  %v257_v53 = vld [vmem:[#allocation2 + $0x2c] sm:$0x1]  ;;  %v305_v58 = vshrl.u32 %v196_v51, 16  ;;  %v308_v59 = vshll.u32 %v196_v51, 16 }
  0x3a   : > { %378 = vst [vmem:[#allocation2 + $0x24] sm:$0x1] %v377_v48  ;;  %v355_v54 = vld [vmem:[#allocation2 + $0x8] sm:$0xf]  ;;  %v2169_v62 = vld [vmem:[#allocation2] sm:$0x1] }
  0x3b   : > { %250 = vst [vmem:[#allocation2 + $0x14] sm:$0x1] %v249_v46  ;;  %v356_v56 = vsel %vm2142_vm6, %v278_v47, %v355_v54  ;;  %v361_v57 = vld [vmem:[#allocation2 + $0x10] sm:$0xf]  ;;  %v307_v3 = vrot.slane %v305_v58, 7  ;;  %v287_v6 = vrot.slane %v283_v43, 4 }
  0x3c   : > { %227 = vst [vmem:[#allocation2 + $0x28] sm:$0x1] %v226_v55  ;;  %v358_v60 = vld [vmem:[#allocation2 + $0xc] sm:$0x1]  ;;  %v362_v61 = vsel %vm2142_vm6, %v286_v50, %v361_v57  ;;  %v258_v7 = vsel %vm2124_vm5, 0, %v257_v53  ;;  %v211_v8 = vsel %vm2119_vm4, 0, %v2169_v62 }
  0x3d   : > { %357 = vst [vmem:[#allocation2 + $0x8] sm:$0xf] %v356_v56  ;;  %v359_v0 = vsel %vm2119_vm4, %v279_v49, %v358_v60  ;;  %v310_v14 = vor.u32 %v308_v59, %v307_v3  ;;  %v311_v37 = vrot.slane %v307_v3, 4  ;;  %s1992_s23 = smov 16   ;;  %v242_v58 = vld [vmem:[#allocation2 + $0x4] sm:$0x1] }
  0x3e   : > { %v2171_v63 = vld [vmem:[#allocation2 + $0x18] sm:$0xf]  ;;  %363 = vst [vmem:[#allocation2 + $0x10] sm:$0xf] %v362_v61  ;;  %vm419_vm10 = vsmask.f32 3328 }
  0x3f   : > { %v2175_v4 = vld [vmem:[#allocation2 + $0x20] sm:$0xf]  ;;  %v1710_v5 = vrot.slane %v2171_v63, 9  ;;  %v707_v12 = vshrl.u32 %v2171_v63, 16  ;;  %v710_v13 = vshll.u32 %v2171_v63, 16  ;;  %s1993_s5 = smov 8  }
  0x40   : > { %v2189_v10 = vld [vmem:[#allocation2 + $0x1c] sm:$0x1]  ;;  %v1711_v11 = vrot.slane %v2175_v4, 9  ;;  %v721_v16 = vshrl.u32 %v2175_v4, 16  ;;  %360 = vst [vmem:[#allocation2 + $0xc] sm:$0x1] %v359_v0 }
  0x41   : > { %v2194_v15 = vld [vmem:[#allocation2 + $0x24] sm:$0x1]  ;;  %v816_v17 = vrot.slane %v2189_v10, 5  ;;  %v724_v18 = vshll.u32 %v2175_v4, 16  ;;  %259 = vst [vmem:[#allocation2 + $0x2c] sm:$0x1] %v258_v7 }
  0x42   : > { %v820_v19 = vrot.slane %v2194_v15, 5  ;;  %v364_v20 = vld [vmem:[#allocation2 + $0x14] sm:$0x1]  ;;  %v716_v21 = vshll.u32 %v2189_v10, 16  ;;  %v730_v22 = vshll.u32 %v2194_v15, 16  ;;  %vm932_vm13 = vcmask 1043456  }
  0x43   : > { %v817_v23 = vsel %vm2185_vm9, %v1710_v5, %v816_v17  ;;  %v365_v24 = vsel %vm2119_vm4, %v287_v6, %v364_v20  ;;  %v379_v25 = vld [vmem:[#allocation2 + $0x28] sm:$0xf]  ;;  %v2206_v26 = vld [vmem:[#allocation2 + $0x20] sm:$0xf]  ;;  %v2214_v32 = vld [vmem:[#allocation2 + $0x24] sm:$0x1] }
  0x44   : > { %v821_v28 = vsel %vm2185_vm9, %v1711_v11, %v820_v19  ;;  %v872_v29 = vunpack.c.l.b16 %v817_v23  ;;  %366 = vst [vmem:[#allocation2 + $0x14] sm:$0x1] %v365_v24  ;;  %v2210_v30 = vld [vmem:[#allocation2 + $0x8] sm:$0xf]  ;;  %v380_v31 = vsel %vm2142_vm6, %v310_v14, %v379_v25  ;;  %v1069_v43 = vshll.u32 %v2214_v32, 16  ;;  %v1801_v9 = vld [vmem:[%s2792_s1 + $0xc] sm:$0xff] }
  0x45   : > { %v873_v33 = vunpack.c.l.b16 %v821_v28  ;;  %v2216_v34 = vld [vmem:[#allocation2 + $0x10] sm:$0xf]  ;;  %v1708_v35 = vrot.slane %v2210_v30, 9  ;;  %v679_v36 = vshrl.u32 %v2210_v30, 16  ;;  %v682_v41 = vshll.u32 %v2210_v30, 16  ;;  %s1996_s19 = smov 0.0  }
  0x46   : > { %v693_v38 = vshrl.u32 %v2216_v34, 16  ;;  %v696_v39 = vshll.u32 %v2216_v34, 16  ;;  %v1709_v40 = vrot.slane %v2216_v34, 9  ;;  %381 = vst [vmem:[#allocation2 + $0x28] sm:$0xf] %v380_v31  ;;  %v1753_v44 = vrot.slane %v2206_v26, 9 }
  0x47   : > { %v879_v42 = vpack.c.b16 %v873_v33, %v872_v29  ;;  %v1169_v45 = vrot.slane %v2214_v32, 5  ;;  %v2227_v46 = vld [vmem:[#allocation2 + $0x10] sm:$0xf]  ;;  %v2229_v47 = vld [vmem:[#allocation2 + $0xc] sm:$0x1]  ;;  %v1060_v48 = vshrl.u32 %v2206_v26, 16 }
  0x48   : > { %v1063_v49 = vshll.u32 %v2206_v26, 16  ;;  %v2233_v50 = vld [vmem:[#allocation2 + $0x18] sm:$0xf]  ;;  %v808_v51 = vrot.slane %v2229_v47, 5  ;;  %v382_v52 = vld [vmem:[#allocation2 + $0x2c] sm:$0x1] }
  0x49   : > { %884 = vrot.lane.b32.xlu1 %v879_v42, %s1992_s23  ;;  %v2237_v53 = vld [vmem:[#allocation2 + $0x1c] sm:$0x1]  ;;  %v1686_v54 = vrot.slane %v2227_v46, 9  ;;  %v383_v55 = vsel %vm2119_vm4, %v311_v37, %v382_v52  ;;  %v1687_v56 = vrot.slane %v2233_v50, 9  ;;  %212 = vst [vmem:[#allocation2] sm:$0x1] %v211_v8  ;;  %v1170_v3 = vsel %vm2185_vm9, %v1753_v44, %v1169_v45 }
  0x4a   : > { %v567_v57 = vrot.slane %v2237_v53, 5  ;;  %v809_v60 = vsel %vm2185_vm9, %v1708_v35, %v808_v51  ;;  %384 = vst [vmem:[#allocation2 + $0x2c] sm:$0x1] %v383_v55  ;;  %v688_v62 = vshll.u32 %v2229_v47, 16  ;;  %v2255_v6 = vld [vmem:[#allocation2 + $0x8] sm:$0xf] }
  0x4b   : > { %v2244_v59 = vld [vmem:[#allocation2 + $0x14] sm:$0x1]  ;;  %v870_v7 = vunpack.c.l.b16 %v809_v60  ;;  %v243_v14 = vsel %vm2124_vm5, 0, %v242_v58  ;;  %v2263_v17 = vld [vmem:[#allocation2 + $0xc] sm:$0x1]  ;;  %v1685_v19 = vrot.slane %v2255_v6, 9 }
  0x4c   : > { %v2248_v61 = vld [vmem:[#allocation2 + $0x14] sm:$0x1]  ;;  %v812_v0 = vrot.slane %v2244_v59, 5  ;;  %v568_v11 = vsel %vm2185_vm9, %v1687_v56, %v567_v57  ;;  %v702_v20 = vshll.u32 %v2244_v59, 16  ;;  %244 = vst [vmem:[#allocation2 + $0x4] sm:$0x1] %v243_v14 }
  0x4d   : > { %v563_v5 = vrot.slane %v2248_v61, 5  ;;  %v2257_v8 = vld [vmem:[#allocation2 + $0x28] sm:$0xf]  ;;  %v620_v31 = vunpack.c.l.b16 %v568_v11  ;;  %v559_v33 = vrot.slane %v2263_v17, 5  ;;  %v197_v35 = vld [vmem:[%s2111_s6 + $0x14] sm:$0xf]  ;;  %v1225_v11 = vunpack.c.l.b16 %v1170_v3 }
  0x4e   : > { %v813_v23 = vsel %vm2185_vm9, %v1709_v40, %v812_v0  ;;  %v1074_v24 = vshrl.u32 %v2257_v8, 16  ;;  %v1077_v25 = vshll.u32 %v2257_v8, 16  ;;  %v228_v37 = vld [vmem:[#allocation2 + $0x30] sm:$0x1]  ;;  %v1754_v42 = vrot.slane %v2257_v8, 9 }
  0x4f   : > { %v871_v28 = vunpack.c.l.b16 %v813_v23  ;;  %v564_v29 = vsel %vm2185_vm9, %v1686_v54, %v563_v5  ;;  %v229_v40 = vsel %vm2119_vm4, 0, %v228_v37  ;;  %v260_v45 = vld [vmem:[#allocation2 + $0x34] sm:$0x1]  ;;  %v313_v51 = vshrl.u32 %v197_v35, 16 }
  0x50   : > { %v619_v44 = vunpack.c.l.b16 %v564_v29  ;;  %v2278_v55 = vld [vmem:[#allocation2] sm:$0xf]  ;;  %v560_v56 = vsel %vm2185_vm9, %v1685_v19, %v559_v33  ;;  %230 = vst [vmem:[#allocation2 + $0x30] sm:$0x1] %v229_v40  ;;  %v261_v54 = vsel %vm2124_vm5, 0, %v260_v45  ;;  %v316_v57 = vshll.u32 %v197_v35, 16 }
  0x51   : > { %v878_v52 = vpack.c.b16 %v871_v28, %v870_v7  ;;  %v2284_v58 = vld [vmem:[#allocation2 + $0x2c] sm:$0x1]  ;;  %262 = vst [vmem:[#allocation2 + $0x34] sm:$0x1] %v261_v54  ;;  %v315_v0 = vrot.slane %v313_v51, 7  ;;  %v709_v5 = vrot.slane %v707_v12, 4  ;;  %v618_v29 = vunpack.c.l.b16 %v560_v56 }
  0x52   : > { %v626_v60 = vpack.c.b16 %v620_v31, %v619_v44  ;;  %v1173_v7 = vrot.slane %v2284_v58, 5  ;;  %v1684_v14 = vrot.slane %v2278_v55, 9  ;;  %v2291_v19 = vld [vmem:[#allocation2 + $0x28] sm:$0xf]  ;;  %v2293_v23 = vld [vmem:[#allocation2 + $0x2c] sm:$0x1] }
  0x53   : > { %882 = vrot.lane.b32.xlu0 %v878_v52, %s1992_s23  ;;  %v1083_v28 = vshll.u32 %v2284_v58, 16  ;;  %v1712_v31 = vrot.slane %v2291_v19, 9  ;;  %v824_v12 = vrot.slane %v2293_v23, 5  ;;  %v2301_v35 = vld [vmem:[#allocation2 + $0x4] sm:$0x1]  ;;  %v318_v3 = vor.u32 %v316_v57, %v315_v0 }
  0x54   : > { %631 = vrot.lane.b32.xlu1 %v626_v60, %s1992_s23  ;;  %v1174_v33 = vsel %vm2185_vm9, %v1754_v42, %v1173_v7  ;;  %v319_v37 = vrot.slane %v315_v0, 4  ;;  %v555_v40 = vrot.slane %v2301_v35, 5  ;;  %vm420_vm11 = vsmask.f32 7440 }
  0x55   : > { %v1226_v44 = vunpack.c.l.b16 %v1174_v33  ;;  %v712_v45 = vrot.slane %v710_v13, 5  ;;  %v2308_v51 = vsel %vm2185_vm9, %v1712_v31, %v824_v12  ;;  %v718_v52 = vrot.slane %v716_v21, 5  ;;  %vm2323_vm12 = vmor %vm419_vm10, %vm420_vm11 }
  0x56   : > { %v723_v42 = vrot.slane %v721_v16, 4  ;;  %v726_v56 = vrot.slane %v724_v18, 5  ;;  %v556_v57 = vsel %vm2185_vm9, %v1684_v14, %v555_v40  ;;  %v732_v13 = vrot.slane %v730_v22, 5 }
  0x57   : > { %v1232_v54 = vpack.c.b16 %v1226_v44, %v1225_v11  ;;  %v385_v58 = vld [vmem:[#allocation2 + $0x30] sm:$0xf]  ;;  %v713_v63 = vor.u32 %v712_v45, %v709_v5  ;;  %v617_v60 = vunpack.c.l.b16 %v556_v57  ;;  %v681_v18 = vrot.slane %v679_v36, 4  ;;  %v198_v45 = vld [vmem:[%s2111_s6 + $0x18] sm:$0xf] }
  0x58   : > { %v386_v10 = vsel %vm2142_vm6, %v318_v3, %v385_v58  ;;  %v388_v21 = vld [vmem:[#allocation2 + $0x34] sm:$0x1]  ;;  %v727_v4 = vor.u32 %v726_v56, %v723_v42  ;;  %v684_v0 = vrot.slane %v682_v41, 5  ;;  %v690_v5 = vrot.slane %v688_v62, 5 }
  0x59   : > { %1237 = vrot.lane.b32.xlu2 %v1232_v54, %s1992_s23  ;;  %387 = vst [vmem:[#allocation2 + $0x30] sm:$0xf] %v386_v10  ;;  %v389_v15 = vsel %vm2119_vm4, %v319_v37, %v388_v21  ;;  %v714_v22 = vrot.slane %v713_v63, 4  ;;  %v625_v7 = vpack.c.b16 %v618_v29, %v617_v60  ;;  %v695_v14 = vrot.slane %v693_v38, 4  ;;  %v263_v29 = vld [vmem:[#allocation2 + $0x3c] sm:$0x1] }
  0x5a   : > { %390 = vst [vmem:[#allocation2 + $0x34] sm:$0x1] %v389_v15  ;;  %v728_v11 = vrot.slane %v727_v4, 4  ;;  %v698_v36 = vrot.slane %v696_v39, 5  ;;  %v685_v12 = vor.u32 %v684_v0, %v681_v18  ;;  %v704_v30 = vrot.slane %v702_v20, 5 }
  0x5b   : > { %v719_v31 = vsel %vm2323_vm12, %v714_v22, %v718_v52  ;;  %v1062_v41 = vrot.slane %v1060_v48, 4  ;;  %629 = vrot.lane.b32.xlu0 %v625_v7, %s1992_s23  ;;  %v1065_v34 = vrot.slane %v1063_v49, 5  ;;  %v231_v39 = vld [vmem:[#allocation2 + $0x38] sm:$0x1]  ;;  %v1071_v59 = vrot.slane %v1069_v43, 5 }
  0x5c   : > { %v733_v47 = vsel %vm2323_vm12, %v728_v11, %v732_v13  ;;  %v852_v38 = vunpack.c.l.b16 %v719_v31  ;;  %v699_v62 = vor.u32 %v698_v36, %v695_v14  ;;  %v686_v3 = vrot.slane %v685_v12, 4 }
  0x5d   : > { %v853_v33 = vunpack.c.l.b16 %v733_v47  ;;  %v1076_v48 = vrot.slane %v1074_v24, 4  ;;  %v1066_v37 = vor.u32 %v1065_v34, %v1062_v41  ;;  %v1079_v44 = vrot.slane %v1077_v25, 5 }
  0x5e   : > { %v700_v20 = vrot.slane %v699_v62, 4  ;;  %v1085_v40 = vrot.slane %v1083_v28, 5  ;;  %v691_v26 = vsel %vm2323_vm12, %v686_v3, %v690_v5  ;;  %v232_v49 = vsel %vm2119_vm4, 0, %v231_v39 }
  0x5f   : > { %v859_v52 = vpack.c.b16 %v853_v33, %v852_v38  ;;  %v264_v32 = vsel %vm2124_vm5, 0, %v263_v29  ;;  %v850_v42 = vunpack.c.l.b16 %v691_v26  ;;  %v1067_v8 = vrot.slane %v1066_v37, 4  ;;  %233 = vst [vmem:[#allocation2 + $0x38] sm:$0x1] %v232_v49 }
  0x60   : > { %v2364_v43 = vld [vmem:[#allocation2 + $0x30] sm:$0xf]  ;;  %v705_v24 = vsel %vm2323_vm12, %v700_v20, %v704_v30  ;;  %v1080_v25 = vor.u32 %v1079_v44, %v1076_v48  ;;  %v874_v54 = vunpack.c.l.b16 %v2308_v51  ;;  %265 = vst [vmem:[#allocation2 + $0x3c] sm:$0x1] %v264_v32  ;;  %v321_v58 = vshrl.u32 %v198_v45, 16 }
  0x61   : > { %v2368_v28 = vld [vmem:[#allocation2 + $0x34] sm:$0x1]  ;;  %v1713_v56 = vrot.slane %v2364_v43, 9  ;;  %864 = vrot.lane.b32.xlu1 %v859_v52, %s1993_s5  ;;  %v851_v57 = vunpack.c.l.b16 %v705_v24  ;;  %v1072_v13 = vsel %vm2323_vm12, %v1067_v8, %v1071_v59  ;;  %v324_v10 = vshll.u32 %v198_v45, 16  ;;  %v2376_v21 = vld [vmem:[#allocation2 + $0x30] sm:$0xf] }
  0x62   : > { %v828_v63 = vrot.slane %v2368_v28, 5  ;;  %v1081_v60 = vrot.slane %v1080_v25, 4  ;;  %v2378_v18 = vunpack.c.l.b16 %v1072_v13  ;;  %v323_v15 = vrot.slane %v321_v58, 7  ;;  %v2380_v51 = vld [vmem:[#allocation2 + $0x34] sm:$0x1] }
  0x63   : > { %v858_v4 = vpack.c.b16 %v851_v57, %v850_v42  ;;  %v1755_v22 = vrot.slane %v2376_v21, 9  ;;  %v1177_v7 = vrot.slane %v2380_v51, 5  ;;  %v451_v11 = vshrl.u32 %v2227_v46, 16 }
  0x64   : > { %v829_v0 = vsel %vm2185_vm9, %v1713_v56, %v828_v63  ;;  %v1086_v5 = vsel %vm2323_vm12, %v1081_v60, %v1085_v40  ;;  %v326_v31 = vor.u32 %v324_v10, %v323_v15  ;;  %v327_v12 = vrot.slane %v323_v15, 4 }
  0x65   : > { %v875_v14 = vunpack.c.l.b16 %v829_v0  ;;  %862 = vrot.lane.b32.xlu0 %v858_v4, %s1993_s5  ;;  %v1206_v36 = vunpack.c.l.b16 %v1086_v5  ;;  %v2392_v30 = vsel %vm2185_vm9, %v1755_v22, %v1177_v7  ;;  %v453_v41 = vrot.slane %v451_v11, 4 }
  0x66   : > { %v454_v47 = vshll.u32 %v2227_v46, 16  ;;  %v460_v38 = vshll.u32 %v2248_v61, 16  ;;  %v391_v39 = vld [vmem:[#allocation2 + $0x38] sm:$0xf]  ;;  %v1227_v29 = vunpack.c.l.b16 %v2392_v30  ;;  %v465_v33 = vshrl.u32 %v2233_v50, 16 }
  0x67   : > { %v880_v62 = vpack.c.b16 %v875_v14, %v874_v54  ;;  %v1212_v34 = vpack.c.b16 %v1206_v36, %v2378_v18  ;;  %v392_v3 = vsel %vm2142_vm6, %v326_v31, %v391_v39  ;;  %v394_v59 = vld [vmem:[#allocation2 + $0x3c] sm:$0x1]  ;;  %v468_v37 = vshll.u32 %v2233_v50, 16 }
  0x68   : > { %v456_v48 = vrot.slane %v454_v47, 5  ;;  %v462_v20 = vrot.slane %v460_v38, 5  ;;  %393 = vst [vmem:[#allocation2 + $0x38] sm:$0xf] %v392_v3  ;;  %v395_v46 = vsel %vm2119_vm4, %v327_v12, %v394_v59  ;;  %v467_v61 = vrot.slane %v465_v33, 4 }
  0x69   : > { %886 = vrot.lane.b32.xlu2 %v880_v62, %s1992_s23  ;;  %v474_v44 = vshll.u32 %v2237_v53, 16  ;;  %v423_v40 = vshrl.u32 %v2278_v55, 16  ;;  %396 = vst [vmem:[#allocation2 + $0x3c] sm:$0x1] %v395_v46  ;;  %v470_v52 = vrot.slane %v468_v37, 5  ;;  %v426_v26 = vshll.u32 %v2278_v55, 16 }
  0x6a   : > { %v457_v45 = vor.u32 %v456_v48, %v453_v41  ;;  %v432_v49 = vshll.u32 %v2301_v35, 16  ;;  %v437_v24 = vshrl.u32 %v2255_v6, 16  ;;  %v440_v42 = vshll.u32 %v2255_v6, 16 }
  0x6b   : > { %v476_v32 = vrot.slane %v474_v44, 5  ;;  %v425_v50 = vrot.slane %v423_v40, 4  ;;  %v471_v25 = vor.u32 %v470_v52, %v467_v61  ;;  %v428_v56 = vrot.slane %v426_v26, 5  ;;  %v2435_v52 = vld [vmem:[#allocation2 + $0x10] sm:$0xf] }
  0x6c   : > { %v458_v8 = vrot.slane %v457_v45, 4  ;;  %v434_v54 = vrot.slane %v432_v49, 5  ;;  %v439_v53 = vrot.slane %v437_v24, 4  ;;  %v442_v57 = vrot.slane %v440_v42, 5 }
  0x6d   : > { %v446_v58 = vshll.u32 %v2263_v17, 16  ;;  %v735_v63 = vshrl.u32 %v2291_v19, 16  ;;  %v472_v35 = vrot.slane %v471_v25, 4  ;;  %v429_v13 = vor.u32 %v428_v56, %v425_v50  ;;  %v2443_v25 = vld [vmem:[#allocation2 + $0x18] sm:$0xf] }
  0x6e   : > { %v463_v55 = vsel %vm2323_vm12, %v458_v8, %v462_v20  ;;  %v738_v60 = vshll.u32 %v2291_v19, 16  ;;  %v443_v4 = vor.u32 %v442_v57, %v439_v53  ;;  %v744_v17 = vshll.u32 %v2293_v23, 16  ;;  %v2447_v57 = vld [vmem:[#allocation2 + $0x1c] sm:$0x1] }
  0x6f   : > { %v599_v10 = vunpack.c.l.b16 %v463_v55  ;;  %v448_v6 = vrot.slane %v446_v58, 5  ;;  %v737_v18 = vrot.slane %v735_v63, 4  ;;  %v1025_v15 = vld [vmem:[#allocation2 + $0x38] sm:$0xf]  ;;  %v477_v22 = vsel %vm2323_vm12, %v472_v35, %v476_v32 }
  0x70   : > { %v430_v0 = vrot.slane %v429_v13, 4  ;;  %v740_v5 = vrot.slane %v738_v60, 5  ;;  %v1026_v7 = vld [vmem:[#allocation2 + $0x3c] sm:$0x1]  ;;  %v1756_v11 = vrot.slane %v1025_v15, 9  ;;  %v600_v14 = vunpack.c.l.b16 %v477_v22 }
  0x71   : > { %1217 = vrot.lane.b32.xlu2 %v1212_v34, %s1993_s5  ;;  %v444_v36 = vrot.slane %v443_v4, 4  ;;  %v749_v19 = vshrl.u32 %v2364_v43, 16  ;;  %v1181_v31 = vrot.slane %v1026_v7, 5  ;;  %v746_v47 = vrot.slane %v744_v17, 5  ;;  %v2450_v60 = vld [vmem:[#allocation2 + $0x20] sm:$0xf] }
  0x72   : > { %v435_v12 = vsel %vm2323_vm12, %v430_v0, %v434_v54  ;;  %v741_v41 = vor.u32 %v740_v5, %v737_v18  ;;  %v606_v38 = vpack.c.b16 %v600_v14, %v599_v10  ;;  %v752_v59 = vshll.u32 %v2364_v43, 16 }
  0x73   : > { %v449_v62 = vsel %vm2323_vm12, %v444_v36, %v448_v6  ;;  %v597_v39 = vunpack.c.l.b16 %v435_v12  ;;  %v751_v23 = vrot.slane %v749_v19, 4  ;;  %v1182_v34 = vsel %vm2185_vm9, %v1756_v11, %v1181_v31  ;;  %v2458_v11 = vld [vmem:[#allocation2 + $0x28] sm:$0xf]  ;;  %v2463_v31 = vld [vmem:[#allocation2 + $0x2c] sm:$0x1] }
  0x74   : > { %v598_v33 = vunpack.c.l.b16 %v449_v62  ;;  %v742_v3 = vrot.slane %v741_v41, 4  ;;  %v1228_v48 = vunpack.c.l.b16 %v1182_v34  ;;  %611 = vrot.lane.b32.xlu0 %v606_v38, %s1993_s5  ;;  %v758_v20 = vshll.u32 %v2368_v28, 16  ;;  %v2439_v28 = vld [vmem:[#allocation2 + $0x14] sm:$0x1]  ;;  %v199_v62 = vld [vmem:[%s2111_s6 + $0x1c] sm:$0xf] }
  0x75   : > { %v1088_v37 = vshrl.u32 %v2376_v21, 16  ;;  %v1091_v46 = vshll.u32 %v2376_v21, 16  ;;  %v754_v40 = vrot.slane %v752_v59, 5  ;;  %v1097_v45 = vshll.u32 %v2380_v51, 16 }
  0x76   : > { %v605_v61 = vpack.c.b16 %v598_v33, %v597_v39  ;;  %v747_v44 = vsel %vm2323_vm12, %v742_v3, %v746_v47  ;;  %v1233_v43 = vpack.c.b16 %v1228_v48, %v1227_v29  ;;  %v760_v26 = vrot.slane %v758_v20, 5  ;;  %v266_v3 = vld [vmem:[#allocation2 + $0x44] sm:$0x1] }
  0x77   : > { %v854_v49 = vunpack.c.l.b16 %v747_v44  ;;  %v1090_v32 = vrot.slane %v1088_v37, 4  ;;  %v755_v50 = vor.u32 %v754_v40, %v751_v23  ;;  %v1093_v24 = vrot.slane %v1091_v46, 5 }
  0x78   : > { %v1099_v21 = vrot.slane %v1097_v45, 5  ;;  %v1102_v42 = vshrl.u32 %v1025_v15, 16  ;;  %1239 = vrot.lane.b32.xlu1 %v1233_v43, %s1992_s23  ;;  %v1105_v8 = vshll.u32 %v1025_v15, 16  ;;  %v1111_v51 = vshll.u32 %v1026_v7, 16  ;;  %v234_v15 = vld [vmem:[#allocation2 + $0x40] sm:$0x1] }
  0x79   : > { %609 = vrot.lane.b32.xlu2 %v605_v61, %s1993_s5  ;;  %v1032_v30 = vshrl.u32 %v2435_v52, 16  ;;  %v1035_v29 = vshll.u32 %v2435_v52, 16  ;;  %v756_v56 = vrot.slane %v755_v50, 4  ;;  %v1094_v54 = vor.u32 %v1093_v24, %v1090_v32  ;;  %v2456_v7 = vld [vmem:[#allocation2 + $0x24] sm:$0x1] }
  0x7a   : > { %v1104_v53 = vrot.slane %v1102_v42, 4  ;;  %v1041_v58 = vshll.u32 %v2439_v28, 16  ;;  %v1107_v63 = vrot.slane %v1105_v8, 5  ;;  %v1113_v55 = vrot.slane %v1111_v51, 5  ;;  %v674_v45 = vld [vmem:[#allocation2 + $0x38] sm:$0xf] }
  0x7b   : > { %v1034_v35 = vrot.slane %v1032_v30, 4  ;;  %v1037_v13 = vrot.slane %v1035_v29, 5  ;;  %v761_v10 = vsel %vm2323_vm12, %v756_v56, %v760_v26  ;;  %v1095_v4 = vrot.slane %v1094_v54, 4  ;;  %v675_v56 = vld [vmem:[#allocation2 + $0x3c] sm:$0x1] }
  0x7c   : > { %v1043_v6 = vrot.slane %v1041_v58, 5  ;;  %v1046_v18 = vshrl.u32 %v2443_v25, 16  ;;  %v855_v22 = vunpack.c.l.b16 %v761_v10  ;;  %v1108_v0 = vor.u32 %v1107_v63, %v1104_v53  ;;  %v2486_v53 = vld [vmem:[#allocation2 + $0x30] sm:$0xf]  ;;  %v2490_v10 = vld [vmem:[#allocation2 + $0x38] sm:$0xf] }
  0x7d   : > { %v1038_v5 = vor.u32 %v1037_v13, %v1034_v35  ;;  %v1049_v17 = vshll.u32 %v2443_v25, 16  ;;  %v1100_v14 = vsel %vm2323_vm12, %v1095_v4, %v1099_v21  ;;  %v1055_v19 = vshll.u32 %v2447_v57, 16  ;;  %v2488_v13 = vld [vmem:[#allocation2 + $0x34] sm:$0x1] }
  0x7e   : > { %v1048_v36 = vrot.slane %v1046_v18, 4  ;;  %v1688_v12 = vrot.slane %v2450_v60, 9  ;;  %v860_v41 = vpack.c.b16 %v855_v22, %v854_v49  ;;  %v1109_v47 = vrot.slane %v1108_v0, 4  ;;  %v237_v22 = vld [vmem:[#allocation2 + $0x48] sm:$0x1] }
  0x7f   : > { %v1039_v38 = vrot.slane %v1038_v5, 4  ;;  %v1207_v39 = vunpack.c.l.b16 %v1100_v14  ;;  %v1051_v23 = vrot.slane %v1049_v17, 5  ;;  %v571_v34 = vrot.slane %v2456_v7, 5 }
  0x80   : > { %v1689_v33 = vrot.slane %v2458_v11, 9  ;;  %866 = vrot.lane.b32.xlu1 %v860_v41, %s1993_s5  ;;  %v1114_v59 = vsel %vm2323_vm12, %v1109_v47, %v1113_v55  ;;  %v1057_v48 = vrot.slane %v1055_v19, 5  ;;  %v575_v20 = vrot.slane %v2463_v31, 5  ;;  %v269_v19 = vld [vmem:[#allocation2 + $0x4c] sm:$0x1] }
  0x81   : > { %v235_v37 = vsel %vm2119_vm4, 0, %v234_v15  ;;  %v1208_v46 = vunpack.c.l.b16 %v1114_v59  ;;  %v1044_v61 = vsel %vm2323_vm12, %v1039_v38, %v1043_v6  ;;  %v1052_v44 = vor.u32 %v1051_v23, %v1048_v36  ;;  %v2496_v41 = vld [vmem:[#allocation2 + $0x3c] sm:$0x1] }
  0x82   : > { %v572_v40 = vsel %vm2185_vm9, %v1688_v12, %v571_v34  ;;  %236 = vst [vmem:[#allocation2 + $0x40] sm:$0x1] %v235_v37  ;;  %v576_v43 = vsel %vm2185_vm9, %v1689_v33, %v575_v20  ;;  %v267_v49 = vsel %vm2124_vm5, 0, %v266_v3  ;;  %v329_v32 = vshrl.u32 %v199_v62, 16 }
  0x83   : > { %v621_v26 = vunpack.c.l.b16 %v572_v40  ;;  %v1213_v50 = vpack.c.b16 %v1208_v46, %v1207_v39  ;;  %v1053_v24 = vrot.slane %v1052_v44, 4  ;;  %v622_v21 = vunpack.c.l.b16 %v576_v43  ;;  %268 = vst [vmem:[#allocation2 + $0x44] sm:$0x1] %v267_v49 }
  0x84   : > { %v332_v42 = vshll.u32 %v199_v62, 16  ;;  %v1203_v8 = vunpack.c.l.b16 %v1044_v61  ;;  %v331_v51 = vrot.slane %v329_v32, 7  ;;  %v763_v30 = vshrl.u32 %v674_v45, 16 }
  0x85   : > { %1219 = vrot.lane.b32.xlu0 %v1213_v50, %s1993_s5  ;;  %v1058_v29 = vsel %vm2323_vm12, %v1053_v24, %v1057_v48  ;;  %v766_v54 = vshll.u32 %v674_v45, 16  ;;  %v1714_v55 = vrot.slane %v674_v45, 9  ;;  %v832_v35 = vrot.slane %v675_v56, 5 }
  0x86   : > { %v1204_v58 = vunpack.c.l.b16 %v1058_v29  ;;  %v334_v63 = vor.u32 %v332_v42, %v331_v51  ;;  %v627_v4 = vpack.c.b16 %v622_v21, %v621_v26  ;;  %v335_v6 = vrot.slane %v331_v51, 4 }
  0x87   : > { %v765_v18 = vrot.slane %v763_v30, 4  ;;  %v768_v15 = vrot.slane %v766_v54, 5  ;;  %v772_v17 = vshll.u32 %v675_v56, 16  ;;  %v507_v14 = vshrl.u32 %v2486_v53, 16 }
  0x88   : > { %v1211_v0 = vpack.c.b16 %v1204_v58, %v1203_v8  ;;  %v510_v36 = vshll.u32 %v2486_v53, 16  ;;  %v516_v47 = vshll.u32 %v2488_v13, 16  ;;  %v521_v38 = vshrl.u32 %v2490_v10, 16 }
  0x89   : > { %v397_v5 = vld [vmem:[#allocation2 + $0x40] sm:$0xf]  ;;  %v524_v62 = vshll.u32 %v2490_v10, 16  ;;  %v769_v23 = vor.u32 %v768_v15, %v765_v18  ;;  %v509_v34 = vrot.slane %v507_v14, 4  ;;  %v530_v20 = vshll.u32 %v2496_v41, 16 }
  0x8a   : > { %v398_v12 = vsel %vm2142_vm6, %v334_v63, %v397_v5  ;;  %1215 = vrot.lane.b32.xlu1 %v1211_v0, %s1993_s5  ;;  %v400_v39 = vld [vmem:[#allocation2 + $0x44] sm:$0x1]  ;;  %v512_v33 = vrot.slane %v510_v36, 5  ;;  %v523_v27 = vrot.slane %v521_v38, 4  ;;  %v238_v37 = vsel %vm2119_vm4, 0, %v237_v22 }
  0x8b   : > { %399 = vst [vmem:[#allocation2 + $0x40] sm:$0xf] %v398_v12  ;;  %v401_v3 = vsel %vm2119_vm4, %v335_v6, %v400_v39  ;;  %v526_v48 = vrot.slane %v524_v62, 5  ;;  %v833_v46 = vsel %vm2185_vm9, %v1714_v55, %v832_v35  ;;  %v270_v61 = vsel %vm2124_vm5, 0, %v269_v19 }
  0x8c   : > { %402 = vst [vmem:[#allocation2 + $0x44] sm:$0x1] %v401_v3  ;;  %v513_v59 = vor.u32 %v512_v33, %v509_v34  ;;  %v479_v44 = vshrl.u32 %v2450_v60, 16  ;;  %v482_v40 = vshll.u32 %v2450_v60, 16  ;;  %v770_v45 = vrot.slane %v769_v23, 4 }
  0x8d   : > { %633 = vrot.lane.b32.xlu0 %v627_v4, %s1992_s23  ;;  %239 = vst [vmem:[#allocation2 + $0x48] sm:$0x1] %v238_v37  ;;  %v774_v43 = vrot.slane %v772_v17, 5  ;;  %v518_v26 = vrot.slane %v516_v47, 5  ;;  %v527_v49 = vor.u32 %v526_v48, %v523_v27  ;;  %v488_v24 = vshll.u32 %v2456_v7, 16 }
  0x8e   : > { %271 = vst [vmem:[#allocation2 + $0x4c] sm:$0x1] %v270_v61  ;;  %v514_v1 = vrot.slane %v513_v59, 4  ;;  %v481_v32 = vrot.slane %v479_v44, 4  ;;  %v484_v50 = vrot.slane %v482_v40, 5  ;;  %v532_v42 = vrot.slane %v530_v20, 5 }
  0x8f   : > { %v528_v21 = vrot.slane %v527_v49, 4  ;;  %v493_v8 = vshrl.u32 %v2458_v11, 16  ;;  %v876_v51 = vunpack.c.l.b16 %v833_v46  ;;  %v496_v60 = vshll.u32 %v2458_v11, 16 }
  0x90   : > { %v485_v29 = vor.u32 %v484_v50, %v481_v32  ;;  %v502_v56 = vshll.u32 %v2463_v31, 16  ;;  %v490_v55 = vrot.slane %v488_v24, 5  ;;  %v775_v7 = vsel %vm2323_vm12, %v770_v45, %v774_v43 }
  0x91   : > { %v519_v4 = vsel %vm2323_vm12, %v514_v1, %v518_v26  ;;  %v533_v17 = vsel %vm2323_vm12, %v528_v21, %v532_v42  ;;  %v495_v12 = vrot.slane %v493_v8, 4  ;;  %v856_v34 = vunpack.c.l.b16 %v775_v7 }
  0x92   : > { %v676_v2 = vld [vmem:[#allocation2 + $0x40] sm:$0xf]  ;;  %v486_v15 = vrot.slane %v485_v29, 4  ;;  %v603_v33 = vunpack.c.l.b16 %v519_v4  ;;  %v498_v3 = vrot.slane %v496_v60, 5  ;;  %v604_v59 = vunpack.c.l.b16 %v533_v17 }
  0x93   : > { %v1027_v30 = vld [vmem:[#allocation2 + $0x40] sm:$0xf]  ;;  %v1715_v54 = vrot.slane %v676_v2, 9  ;;  %v777_v58 = vshrl.u32 %v676_v2, 16  ;;  %v780_v63 = vshll.u32 %v676_v2, 16  ;;  %v504_v61 = vrot.slane %v502_v56, 5 }
  0x94   : > { %v677_v35 = vld [vmem:[#allocation2 + $0x44] sm:$0x1]  ;;  %v1757_v18 = vrot.slane %v1027_v30, 9  ;;  %v1029_v31 = vld [vmem:[#allocation2 + $0x48] sm:$0xf]  ;;  %v491_v20 = vsel %vm2323_vm12, %v486_v15, %v490_v55  ;;  %v499_v46 = vor.u32 %v498_v3, %v495_v12  ;;  %v1751_v44 = vrot.slane %v2435_v52, 9 }
  0x95   : > { %v2522_v6 = vld [vmem:[#allocation2 + $0x44] sm:$0x1]  ;;  %v836_v22 = vrot.slane %v677_v35, 5  ;;  %v779_v0 = vrot.slane %v777_v58, 4  ;;  %v782_v11 = vrot.slane %v780_v63, 5  ;;  %v786_v5 = vshll.u32 %v677_v35, 16 }
  0x96   : > { %v1030_v14 = vld [vmem:[#allocation2 + $0x4c] sm:$0x1]  ;;  %v1185_v36 = vrot.slane %v2522_v6, 5  ;;  %v1758_v19 = vrot.slane %v1029_v31, 9  ;;  %v1161_v43 = vrot.slane %v2439_v28, 5  ;;  %v1752_v26 = vrot.slane %v2443_v25, 9 }
  0x97   : > { %v837_v47 = vsel %vm2185_vm9, %v1715_v54, %v836_v22  ;;  %v783_v38 = vor.u32 %v782_v11, %v779_v0  ;;  %v788_v62 = vrot.slane %v786_v5, 5  ;;  %v1189_v39 = vrot.slane %v1030_v14, 5 }
  0x98   : > { %v877_v23 = vunpack.c.l.b16 %v837_v47  ;;  %v1186_v48 = vsel %vm2185_vm9, %v1757_v18, %v1185_v36  ;;  %v500_v1 = vrot.slane %v499_v46, 4  ;;  %v1165_v32 = vrot.slane %v2447_v57, 5 }
  0x99   : > { %v784_v27 = vrot.slane %v783_v38, 4  ;;  %v1190_v45 = vsel %vm2185_vm9, %v1758_v19, %v1189_v39  ;;  %v1116_v50 = vshrl.u32 %v1027_v30, 16  ;;  %v608_v24 = vpack.c.b16 %v604_v59, %v603_v33  ;;  %v2567_v38 = vld [vmem:[%s2792_s1 + $0x18] sm:$0xff] }
  0x9a   : > { %v881_v37 = vpack.c.b16 %v877_v23, %v876_v51  ;;  %v1229_v21 = vunpack.c.l.b16 %v1186_v48  ;;  %v601_v52 = vunpack.c.l.b16 %v491_v20  ;;  %v1119_v42 = vshll.u32 %v1027_v30, 16 }
  0x9b   : > { %v789_v40 = vsel %vm2323_vm12, %v784_v27, %v788_v62  ;;  %v1230_v2 = vunpack.c.l.b16 %v1190_v45  ;;  %v505_v51 = vsel %vm2323_vm12, %v500_v1, %v504_v61  ;;  %v1162_v28 = vsel %vm2185_vm9, %v1751_v44, %v1161_v43  ;;  %v661_v61 = vld [vmem:[%s2792_s1 + $0x8] sm:$0xf] }
  0x9c   : > { %888 = vrot.lane.b32.xlu1 %v881_v37, %s1992_s23  ;;  %v857_v49 = vunpack.c.l.b16 %v789_v40  ;;  %v602_v25 = vunpack.c.l.b16 %v505_v51  ;;  %v1118_v29 = vrot.slane %v1116_v50, 4  ;;  %v1121_v60 = vrot.slane %v1119_v42, 5  ;;  %v1803_v50 = vld [vmem:[#allocation2 + $0x24] sm:$0xf0]  ;;  %v1798_v51 = vld [vmem:[#allocation2 + $0x1c] sm:$0xf0] }
  0x9d   : > { %v1125_v56 = vshll.u32 %v2522_v6, 16  ;;  %v1166_v57 = vsel %vm2185_vm9, %v1752_v26, %v1165_v32  ;;  %v1130_v54 = vshrl.u32 %v1029_v31, 16  ;;  %v1133_v30 = vshll.u32 %v1029_v31, 16  ;;  %v1777_v6 = vld [vmem:[%s2792_s1 + $0x20] sm:$0xf] }
  0x9e   : > { %v861_v8 = vpack.c.b16 %v857_v49, %v856_v34  ;;  %v1139_v58 = vshll.u32 %v1030_v14, 16  ;;  %v607_v63 = vpack.c.b16 %v602_v25, %v601_v52  ;;  %v1122_v55 = vor.u32 %v1121_v60, %v1118_v29  ;;  %v1796_v26 = vld [vmem:[%s2792_s1] sm:$0xff]  ;;  %v1718_v29 = vld [vmem:[#allocation2 + $0x8] sm:$0xf]  ;;  %v1797_v60 = vld [vmem:[#allocation2 + $0xc] sm:$0xf0] }
  0x9f   : > { %v1132_v35 = vrot.slane %v1130_v54, 4  ;;  %v1135_v7 = vrot.slane %v1133_v30, 5  ;;  %v1234_v4 = vpack.c.b16 %v1230_v2, %v1229_v21  ;;  %v1223_v18 = vunpack.c.l.b16 %v1162_v28  ;;  %v1765_v32 = vld [vmem:[#allocation2 + $0x20] sm:$0xf]  ;;  %v1722_v2 = vld [vmem:[#allocation2 + $0x18] sm:$0xf] }
  0xa0   : > { %868 = vrot.lane.b32.xlu0 %v861_v8, %s1993_s5  ;;  %613 = vrot.lane.b32.xlu2 %v607_v63, %s1993_s5  ;;  %v1224_v15 = vunpack.c.l.b16 %v1166_v57  ;;  %v1127_v22 = vrot.slane %v1125_v56, 5  ;;  %v1123_v0 = vrot.slane %v1122_v55, 4  ;;  %v1141_v5 = vrot.slane %v1139_v58, 5 }
  0xa1   : > { %v1136_v11 = vor.u32 %v1135_v7, %v1132_v35  ;;  %v1272_v31 = vunpack.c.l.b16 %v1777_v6  ;;  %v1690_v23 = vrot.slane %v2486_v53, 9  ;;  %v579_v34 = vrot.slane %v2488_v13, 5  ;;  %v1734_v53 = vld [vmem:[%s2792_s1 + $0x14] sm:$0xf]  ;;  %v1694_v35 = vld [vmem:[#allocation2] sm:$0xf] }
  0xa2   : > { %v1231_v36 = vpack.c.b16 %v1224_v15, %v1223_v18  ;;  %v1128_v19 = vsel %vm2323_vm12, %v1123_v0, %v1127_v22  ;;  %v1691_v16 = vrot.slane %v2490_v10, 9  ;;  %v583_v33 = vrot.slane %v2496_v41, 5  ;;  %v1792_v7 = vld [vmem:[#allocation2 + $0x4] sm:$0xf0]  ;;  %v1793_v18 = vld [vmem:[#allocation2 + $0x14] sm:$0xf0] }
  0xa3   : > { %v1137_v17 = vrot.slane %v1136_v11, 4  ;;  %v1274_v14 = vpack.c.b16 %v1272_v31, %v1272_v31  ;;  %v1209_v62 = vunpack.c.l.b16 %v1128_v19  ;;  %v580_v27 = vsel %vm2185_vm9, %v1690_v23, %v579_v34  ;;  %v1799_v19 = vld [vmem:[#allocation2 + $0x2c] sm:$0xf0] }
  0xa4   : > { %615 = vrot.lane.b32.xlu1 %v608_v24, %s1993_s5  ;;  %v584_v59 = vsel %vm2185_vm9, %v1691_v16, %v583_v33  ;;  %v623_v48 = vunpack.c.l.b16 %v580_v27  ;;  %v919_v13 = vunpack.c.l.b16 %v1734_v53  ;;  %v970_v44 = vunpack.c.l.b16 %v661_v61  ;;  %v1794_v27 = vld [vmem:[#allocation2 + $0x24] sm:$0xf0]  ;;  %v1802_v53 = vld [vmem:[#allocation2 + $0x14] sm:$0xf0] }
  0xa5   : > { %v1142_v12 = vsel %vm2323_vm12, %v1137_v17, %v1141_v5  ;;  %v2561_v47 = vsel %vm932_vm13, %v1274_v14, 0  ;;  %v624_v20 = vunpack.c.l.b16 %v584_v59  ;;  %v1766_v24 = vor.u32 %v1803_v50, %v1765_v32  ;;  %v1706_v32 = vld [vmem:[#allocation2 + $0x30] sm:$0xf]  ;;  %v1795_v50 = vld [vmem:[#allocation2 + $0x34] sm:$0xf0] }
  0xa6   : > { %1812 = vmatpush.bf16.msra.mxu2 %v2561_v47  ;;  %v1210_v39 = vunpack.c.l.b16 %v1142_v12  ;;  %v921_v41 = vpack.c.b16 %v919_v13, %v919_v13  ;;  %v972_v40 = vpack.c.b16 %v970_v44, %v970_v44  ;;  %vm637_vm14 = vcmask 64512  }
  0xa7   : > { %v628_v10 = vpack.c.b16 %v624_v20, %v623_v48  ;;  %vm650_vm15 = vcmask 130048   ;;  %vm923_vm1 = vcmask 195584   ;;  %v1723_v25 = vor.u32 %v1798_v51, %v1722_v2  ;;  %v1761_v20 = vld [vmem:[#allocation2 + $0x10] sm:$0xf] }
  0xa8   : > { %1241 = vrot.lane.b32.xlu0 %v1234_v4, %s1992_s23  ;;  %1235 = vrot.lane.b32.xlu2 %v1231_v36, %s1992_s23  ;;  %v1214_v3 = vpack.c.b16 %v1210_v39, %v1209_v62  ;;  %v934_v46 = vsel %vm932_vm13, %v921_v41, 0  ;;  %v983_v43 = vsel %vm932_vm13, %v972_v40, 0  ;;  %v1719_v54 = vor.u32 %v1797_v60, %v1718_v29  ;;  %v1698_v4 = vld [vmem:[#allocation2 + $0x10] sm:$0xf]  ;;  %v1726_v36 = vld [vmem:[#allocation2 + $0x28] sm:$0xf] }
  0xa9   : > { %942 = vmatpush.bf16.msra.mxu0 %v934_v46  ;;  %1808 = vmatpush.bf16.msra.mxu3 %v934_v46  ;;  %v1695_v15 = vor.u32 %v1792_v7, %v1694_v35  ;;  %v1699_v6 = vor.u32 %v1793_v18, %v1698_v4  ;;  %v1727_v12 = vor.u32 %v1799_v19, %v1726_v36  ;;  %v2636_v36 = vld [vmem:[%s2793_s2] ss:$0 sm:$0xff]  ;;  %vm1390_vm2 = vcmask 24576  }
  0xaa   : > { %1813 = vmatpush.bf16.msra.mxu2 %v2567_v38  ;;  %1810 = vmatpush.bf16.msra.mxu1 %v983_v43 }
  0xad   : > { %943 = vmatpush.bf16.msra.mxu0 %v1801_v9  ;;  %1809 = vmatpush.bf16.msra.mxu3 %v1801_v9 }
  0xae   : > { %1811 = vmatpush.bf16.msra.mxu1 %v1796_v26 }
  0xb0   : > { %1221 = vrot.lane.b32.xlu2 %v1214_v3, %s1993_s5  ;;  %v1702_v3 = vld [vmem:[#allocation2 + $0x20] sm:$0xf] }
  0xb1   : > { %991 = vmatpush.bf16.msrb.mxu0 %v983_v43  ;;  %v1703_v48 = vor.u32 %v1794_v27, %v1702_v3  ;;  %v1800_v43 = vld [vmem:[#allocation2 + $0x3c] sm:$0xf0] }
  0xb3   : > { %v1238_v37 = vpop.permute.xlu2 %1237 }
  0xb5   : > { %992 = vmatpush.bf16.msrb.mxu0 %v1796_v26 }
  0xb8   : > { %635 = vrot.lane.b32.xlu2 %v628_v10, %s1992_s23  ;;  %v1762_v10 = vor.u32 %v1802_v53, %v1761_v20  ;;  %s1994_s23 = smov 124  }
  0xbb   : > { %v885_v45 = vpop.permute.xlu1 %884 }
  0xc3   : > { %v887_v49 = vpop.permute.xlu2 %886 }
  0xc5   : > { %v883_v1 = vpop.permute.xlu0 %882 }
  0xc6   : > { %v632_v21 = vpop.permute.xlu1 %631 }
  0xcb   : > { %v1218_v52 = vpop.permute.xlu2 %1217 }
  0xcc   : > { %v1248_v42 = vsel %vm637_vm14, %v1766_v24, %v1218_v52  ;;  %v1773_v52 = vld [vmem:[#allocation2 + $0x40] sm:$0xf] }
  0xcd   : > { %v1258_v8 = vsel %vm650_vm15, %v1248_v42, %v1238_v37  ;;  %v630_v28 = vpop.permute.xlu0 %629  ;;  %v1805_v42 = vld [vmem:[#allocation2 + $0x44] sm:$0xf0] }
  0xce   : > { %1783 = vmatmul.msk.bf16.vlgmr.msra.gmra.mxu2 %vm923_vm1, %v1258_v8  ;;  %v1707_v8 = vor.u32 %v1795_v50, %v1706_v32 }
  0xd3   : > { %v865_v56 = vpop.permute.xlu1 %864  ;;  %v610_v22 = vpop.permute.xlu2 %609 }
  0xd4   : > { %v895_v57 = vsel %vm637_vm14, %v1723_v25, %v865_v56  ;;  %v640_v0 = vsel %vm637_vm14, %v1695_v15, %v610_v22 }
  0xd5   : > { %v905_v30 = vsel %vm650_vm15, %v895_v57, %v885_v45  ;;  %v652_v31 = vsel %vm650_vm15, %v640_v0, %v630_v28  ;;  %v1730_v45 = vld [vmem:[#allocation2 + $0x38] sm:$0xf]  ;;  %v1774_v28 = vor.u32 %v1805_v42, %v1773_v52 }
  0xd6   : > { %1740 = vmatmul.msk.bf16.vlgmr.msra.gmra.mxu3 %vm923_vm1, %v905_v30 }
  0xd7   : > { %v863_v58 = vpop.permute.xlu0 %862 }
  0xd8   : > { %v892_v63 = vsel %vm637_vm14, %v1719_v54, %v863_v58 }
  0xd9   : > { %v903_v55 = vsel %vm650_vm15, %v892_v63, %v883_v1  ;;  %v1731_v1 = vor.u32 %v1800_v43, %v1730_v45 }
  0xda   : > { %1739 = vmatmul.msk.bf16.vlgmr.msra.gmra.mxu0 %vm923_vm1, %v903_v55 }
  0xdb   : > { %1293 = vmatpush.bf16.msra.mxu0 %v2561_v47  ;;  %v1769_v47 = vld [vmem:[#allocation2 + $0x30] sm:$0xf] }
  0xdf   : > { %1294 = vmatpush.bf16.msra.mxu0 %v2567_v38  ;;  %v1804_v38 = vld [vmem:[#allocation2 + $0x34] sm:$0xf0] }
  0xe0   : > { %v1770_v23 = vor.u32 %v1804_v38, %v1769_v47 }
  0xe6   : > { %v612_v11 = vpop.permute.xlu0 %611 }
  0xe7   : > { %v643_v5 = vsel %vm637_vm14, %v1699_v6, %v612_v11 }
  0xe8   : > { %v654_v17 = vsel %vm650_vm15, %v643_v5, %v632_v21 }
  0xe9   : > { %1748 = vmatmul.msk.bf16.vlgmr.msra.gmra.mxu1 %vm923_vm1, %v654_v17 }
  0xea   : > { %1747 = vmatmul.msk.bf16.vlgmr.msrb.gmra.mxu0 %vm923_vm1, %v652_v31  ;;  %v1240_v14 = vpop.permute.xlu1 %1239 }
  0xf2   : > { %v867_v62 = vpop.permute.xlu1 %866 }
  0xf3   : > { %v898_v39 = vsel %vm637_vm14, %v1727_v12, %v867_v62 }
  0xf4   : > { %v907_v34 = vsel %vm650_vm15, %v898_v39, %v887_v49 }
  0xf5   : > { %1741 = vmatmul.msk.bf16.gmra.mxu3 %vm923_vm1, %v907_v34 }
  0xf7   : > { %v1220_v16 = vpop.permute.xlu0 %1219 }
  0xf8   : > { %v1251_v33 = vsel %vm637_vm14, %v1770_v23, %v1220_v16 }
  0xf9   : > { %v1260_v59 = vsel %vm650_vm15, %v1251_v33, %v1240_v14 }
  0xfa   : > { %1784 = vmatmul.msk.bf16.gmra.mxu2 %vm923_vm1, %v1260_v59  ;;  %v614_v13 = vpop.permute.xlu2 %613 }
  0xfb   : > { %v646_v41 = vsel %vm637_vm14, %v1703_v48, %v614_v13 }
  0xfc   : > { %v1216_v61 = vpop.permute.xlu1 %1215 }
  0xfd   : > { %v1245_v9 = vsel %vm637_vm14, %v1762_v10, %v1216_v61 }
  0xff   : > { %v634_v37 = vpop.permute.xlu0 %633 }
 0x100   : > { %v656_v46 = vsel %vm650_vm15, %v646_v41, %v634_v37 }
 0x101   : > { %1749 = vmatmul.msk.bf16.gmra.mxu1 %vm923_vm1, %v656_v46 }
 0x102   : > { %v1236_v44 = vpop.permute.xlu2 %1235 }
 0x103   : > { %v1256_v40 = vsel %vm650_vm15, %v1245_v9, %v1236_v44 }
 0x104   : > { %1782 = vmatmul.msk.bf16.vlgmr.msra.gmra.mxu0 %vm923_vm1, %v1256_v40 }
 0x10a   : > { %v1222_v26 = vpop.permute.xlu2 %1221 }
 0x10b   : > { %v1254_v56 = vsel %vm637_vm14, %v1774_v28, %v1222_v26 }
 0x10e   : > { %v889_v49 = vpop.permute.xlu1 %888 }
 0x112   : > { %v869_v24 = vpop.permute.xlu0 %868  ;;  %v636_v51 = vpop.permute.xlu2 %635 }
 0x113   : > { %v901_v21 = vsel %vm637_vm14, %v1731_v1, %v869_v24 }
 0x114   : > { %v909_v2 = vsel %vm650_vm15, %v901_v21, %v889_v49 }
 0x115   : > { %1742 = vmatmul.msk.bf16.gmra.mxu3 %vm923_vm1, %v909_v2 }
 0x116   : > { %v616_v25 = vpop.permute.xlu1 %615 }
 0x117   : > { %v649_v29 = vsel %vm637_vm14, %v1707_v8, %v616_v25 }
 0x118   : > { %v658_v60 = vsel %vm650_vm15, %v649_v29, %v636_v51 }
 0x119   : > { %1750 = vmatmul.msk.bf16.gmra.mxu1 %vm923_vm1, %v658_v60 }
 0x11a   : > { %v1242_v57 = vpop.permute.xlu0 %1241 }
 0x11b   : > { %v1262_v54 = vsel %vm650_vm15, %v1254_v56, %v1242_v57 }
 0x11c   : > { %1785 = vmatmul.msk.bf16.gmra.mxu2 %vm923_vm1, %v1262_v54 }
 0x151   : > { %v1301_v4 = vpop.f32.mrf.mxu2 }
 0x157   : > { %v945_v30 = vpop.f32.mrf.mxu0 }
 0x159   : > { %v950_v35 = vpop.f32.mrf.mxu3  ;;  %v1303_v6 = vpop.f32.mrf.mxu2 }
 0x15f   : > { %v947_v58 = vpop.f32.mrf.mxu0 }
 0x161   : > { %v952_v15 = vpop.f32.mrf.mxu3 }
 0x166   : > { %v999_v55 = vpop.f32.mrf.mxu1 }
 0x167   : > { %v994_v63 = vpop.f32.mrf.mxu0  ;;  %v1000_v31 = vadd.f32 %v999_v55, %v950_v35 }
 0x168   : > { %v995_v5 = vadd.f32 %v994_v63, %v945_v30 }
 0x169   : > { %v1318_v12 = vadd.f32 %v1301_v4, %v1000_v31 }
 0x16b   : > { %v2645_v16 = vadd.f32 %v2636_v36, %v1318_v12 }
 0x16d   : > { %v1359_v10 = vmul.f32 %v2645_v16, %v2645_v16  ;;  %v1339_v45 = vsel %vm637_vm14, %v2645_v16, 0.0 }
 0x16e   : > { %v1001_v18 = vpop.f32.mrf.mxu1 }
 0x16f   : > { %v996_v7 = vpop.f32.mrf.mxu0  ;;  %v1002_v62 = vadd.f32 %v1001_v18, %v952_v15  ;;  %v1368_v49 = vsel %vm637_vm14, %v1359_v10, 0.0 }
 0x170   : > { %v997_v14 = vadd.f32 %v996_v7, %v947_v58 }
 0x171   : > { %v1319_v27 = vadd.f32 %v1303_v6, %v1002_v62 }
 0x173   : > { %v2659_v37 = vadd.f32 %v2636_v36, %v1319_v27 }
 0x175   : > { %v1360_v1 = vmul.f32 %v2659_v37, %v2659_v37  ;;  %v1341_v52 = vsel %vm637_vm14, %v2659_v37, 0.0 }
 0x177   : > { %v1370_v8 = vsel %vm637_vm14, %v1360_v1, 0.0 }
 0x178   : > { %v955_v11 = vpop.f32.mrf.mxu3 }
 0x17d   : > { %v1306_v47 = vpop.f32.mrf.mxu2 }
 0x17e   : > { %v1004_v0 = vpop.f32.mrf.mxu1 }
 0x17f   : > { %v1005_v59 = vadd.f32 %v1004_v0, %v955_v11 }
 0x180   : > { %v957_v33 = vpop.f32.mrf.mxu3 }
 0x181   : > { %v1296_v22 = vpop.f32.mrf.mxu0  ;;  %v1320_v46 = vadd.f32 %v1306_v47, %v1005_v59 }
 0x182   : > { %v1316_v17 = vadd.f32 %v1296_v22, %v995_v5 }
 0x183   : > { %v2668_v32 = vadd.f32 %v2636_v36, %v1320_v46 }
 0x184   : > { %v2639_v39 = vadd.f32 %v2636_v36, %v1316_v17 }
 0x185   : > { %v1308_v44 = vpop.f32.mrf.mxu2  ;;  %v1361_v2 = vmul.f32 %v2668_v32, %v2668_v32  ;;  %v1343_v60 = vsel %vm637_vm14, %v2668_v32, 0.0 }
 0x186   : > { %v1006_v23 = vpop.f32.mrf.mxu1  ;;  %v1357_v48 = vmul.f32 %v2639_v39, %v2639_v39  ;;  %v1336_v53 = vsel %vm637_vm14, %v2639_v39, 0.0 }
 0x187   : > { %v1007_v61 = vadd.f32 %v1006_v23, %v957_v33  ;;  %v1372_v54 = vsel %vm637_vm14, %v1361_v2, 0.0 }
 0x188   : > { %v1365_v9 = vsel %vm637_vm14, %v1357_v48, 0.0 }
 0x189   : > { %v1298_v19 = vpop.f32.mrf.mxu0  ;;  %v1321_v50 = vadd.f32 %v1308_v44, %v1007_v61 }
 0x18a   : > { %v1317_v38 = vadd.f32 %v1298_v19, %v997_v14 }
 0x18b   : > { %v2676_v51 = vadd.f32 %v2636_v36, %v1321_v50 }
 0x18c   : > { %v2642_v34 = vadd.f32 %v2636_v36, %v1317_v38 }
 0x18d   : > { %v1362_v30 = vmul.f32 %v2676_v51, %v2676_v51  ;;  %v1345_v35 = vsel %vm637_vm14, %v2676_v51, 0.0 }
 0x18e   : > { %v1358_v3 = vmul.f32 %v2642_v34, %v2642_v34  ;;  %v1337_v20 = vsel %vm637_vm14, %v2642_v34, 0.0 }
 0x18f   : > { %v1338_v41 = vadd.f32 %v1337_v20, %v1336_v53  ;;  %v1374_v18 = vsel %vm637_vm14, %v1362_v30, 0.0 }
 0x190   : > { %v1366_v13 = vsel %vm637_vm14, %v1358_v3, 0.0 }
 0x191   : > { %v1367_v40 = vadd.f32 %v1366_v13, %v1365_v9  ;;  %v1340_v26 = vadd.f32 %v1339_v45, %v1338_v41 }
 0x193   : > { %v1369_v21 = vadd.f32 %v1368_v49, %v1367_v40  ;;  %v1342_v42 = vadd.f32 %v1341_v52, %v1340_v26  ;;  %v1995_v26 = vmov 256.0  }
 0x194   : > { %1885 = vrcp.f32 %v1995_v26 }
 0x195   : > { %v1371_v25 = vadd.f32 %v1370_v8, %v1369_v21  ;;  %v1344_v57 = vadd.f32 %v1343_v60, %v1342_v42 }
 0x196   : > { %v1009_v43 = vpop.f32.mrf.mxu1 }
 0x197   : > { %v1373_v63 = vadd.f32 %v1372_v54, %v1371_v25  ;;  %v1346_v7 = vadd.f32 %v1345_v35, %v1344_v57 }
 0x198   : > { %v960_v24 = vpop.f32.mrf.mxu3 }
 0x199   : > { %v1010_v28 = vadd.f32 %v1009_v43, %v960_v24  ;;  %v1375_v6 = vadd.f32 %v1374_v18, %v1373_v63 }
 0x19a   : > { %v1886_v49 = vpop.eup %1885 }
 0x19b   : > { %v1402_v1 = vmul.f32 256.0, %v1886_v49  ;;  %vm1406_vm3 = vweird.f32 %v1886_v49 }
 0x19d   : > { %v1403_v50 = vsub.f32 1.0, %v1402_v1 }
 0x19e   : > { %v1011_v55 = vpop.f32.mrf.mxu1 }
 0x19f   : > { %v1311_v29 = vpop.f32.mrf.mxu2  ;;  %v1404_v2 = vmul.f32 %v1886_v49, %v1403_v50 }
 0x1a0   : > { %v1322_v56 = vadd.f32 %v1311_v29, %v1010_v28  ;;  %v962_v4 = vpop.f32.mrf.mxu3 }
 0x1a1   : > { %v1012_v22 = vadd.f32 %v1011_v55, %v962_v4 }
 0x1a2   : > { %v2684_v58 = vadd.f32 %v2636_v36, %v1322_v56  ;;  %v1405_v56 = vadd.f32 %v1886_v49, %v1404_v2 }
 0x1a4   : > { %v1363_v15 = vmul.f32 %v2684_v58, %v2684_v58  ;;  %v1347_v11 = vsel %vm637_vm14, %v2684_v58, 0.0  ;;  %v1407_v63 = vsel %vm1406_vm3, %v1886_v49, %v1405_v56 }
 0x1a5   : > { %v1348_v31 = vadd.f32 %v1347_v11, %v1346_v7 }
 0x1a6   : > { %v1376_v17 = vsel %vm637_vm14, %v1363_v15, 0.0 }
 0x1a7   : > { %v1313_v0 = vpop.f32.mrf.mxu2  ;;  %v1377_v19 = vadd.f32 %v1376_v17, %v1375_v6 }
 0x1a8   : > { %v1323_v5 = vadd.f32 %v1313_v0, %v1012_v22 }
 0x1aa   : > { %v2695_v14 = vadd.f32 %v2636_v36, %v1323_v5 }
 0x1ac   : > { %v1349_v12 = vsel %vm637_vm14, %v2695_v14, 0.0  ;;  %v1364_v47 = vmul.f32 %v2695_v14, %v2695_v14 }
 0x1ad   : > { %v1350_v38 = vadd.f32 %v1349_v12, %v1348_v31 }
 0x1ae   : > { %v1378_v62 = vsel %vm637_vm14, %v1364_v47, 0.0 }
 0x1af   : > { %v1351_v23 = vrot.slane %v1350_v38, 4  ;;  %v1379_v33 = vadd.f32 %v1378_v62, %v1377_v19 }
 0x1b1   : > { %v1352_v3 = vadd.f32 %v1351_v23, %v1350_v38  ;;  %v1380_v27 = vrot.slane %v1379_v33, 4 }
 0x1b3   : > { %v1353_v59 = vrot.slane %v1352_v3, 2  ;;  %v1381_v48 = vadd.f32 %v1380_v27, %v1379_v33 }
 0x1b5   : > { %v1354_v20 = vadd.f32 %v1353_v59, %v1352_v3  ;;  %v1382_v53 = vrot.slane %v1381_v48, 2 }
 0x1b7   : > { %v1355_v36 = vrot.slane %v1354_v20, 1  ;;  %v1383_v13 = vadd.f32 %v1382_v53, %v1381_v48 }
 0x1b9   : > { %v1356_v10 = vadd.f32 %v1355_v36, %v1354_v20  ;;  %v1384_v41 = vrot.slane %v1383_v13, 1 }
 0x1bb   : > { %1455 = vrot.lane.b32.xlu2 %v1356_v10, %s1994_s23  ;;  %v1391_v46 = vsel %vm1390_vm2, %v1356_v10, 0.0  ;;  %v1385_v61 = vadd.f32 %v1384_v41, %v1383_v13 }
 0x1bc   : > { %1392 = vadd.xlane.f32.xlu0 %v1391_v46 }
 0x1bd   : > { %v1410_v9 = vsel %vm1390_vm2, %v1385_v61, 0.0 }
 0x1be   : > { %1411 = vadd.xlane.f32.xlu1 %v1410_v9  ;;  %v1388_v9 = vlaneseq }
 0x1c3   : > { %1478 = vrot.lane.b32.xlu2 %v1385_v61, %s1994_s23 }
 0x215   : > { %v1456_v44 = vpop.permute.xlu2 %1455 }
 0x216   : > { %v1458_v40 = vsel %vm1390_vm2, %v1456_v44, 0.0  ;;  %v1389_v44 = vand.u32 127, %v1388_v9 }
 0x217   : > { %1459 = vadd.xlane.f32.xlu2 %v1458_v40 }
 0x218   : > { %vm1516_vm10 = vcmp.ge.s32.totalorder %v1389_v44, 4  ;;  %vm1517_vm11 = vcmp.lt.s32.totalorder %v1389_v44, 8  ;;  %vm1446_vm12 = vcmp.lt.s32.totalorder %v1389_v44, 4 }
 0x219   : > { %vm1518_vm13 = vmand %vm1516_vm10, %vm1517_vm11 }
 0x21d   : > { %v1479_v45 = vpop.permute.xlu2 %1478 }
 0x21e   : > { %v1481_v43 = vsel %vm1390_vm2, %v1479_v45, 0.0 }
 0x21f   : > { %1482 = vadd.xlane.f32.xlu0 %v1481_v43  ;;  %v1334_v43 = vld [vmem:[%s2793_s2 + $0x1] sm:$0x1] }
 0x22f   : > { %v1393_v24 = vpop.xlane.xlu0 %1392 }
 0x230   : > { %v1394_v21 = vrot.slane %v1393_v24, 4 }
 0x231   : > { %v1412_v52 = vpop.xlane.xlu1 %1411 }
 0x232   : > { %v1395_v42 = vadd.f32 %v1394_v21, %v1393_v24  ;;  %v1413_v8 = vrot.slane %v1412_v52, 4 }
 0x234   : > { %v1396_v28 = vrot.slane %v1395_v42, 2  ;;  %v1414_v25 = vadd.f32 %v1413_v8, %v1412_v52  ;;  %v1335_v52 = vld [vmem:[%s2793_s2 + $0x2] sm:$0x1] }
 0x236   : > { %v1415_v29 = vrot.slane %v1414_v25, 2  ;;  %v1397_v60 = vadd.f32 %v1396_v28, %v1395_v42 }
 0x238   : > { %v1416_v57 = vadd.f32 %v1415_v29, %v1414_v25  ;;  %v1398_v54 = vrot.slane %v1397_v60, 1 }
 0x23a   : > { %v1399_v30 = vadd.f32 %v1398_v54, %v1397_v60  ;;  %v1417_v55 = vrot.slane %v1416_v57, 1 }
 0x23c   : > { %1814 = vpush %v1399_v30  ;;  %v1418_v35 = vadd.f32 %v1417_v55, %v1416_v57 }
 0x23d   : > { %1816 = vpush %v1407_v63 }
 0x23e   : > { %1818 = vpush %v1418_v35 }
 0x26d   : > { %s1815_s5 = spop %1814 }
 0x26e   : > { %s2702_s7 = spop %1816 }
 0x26f   : > { %s2705_s8 = smul.f32 %s2702_s7, %s1815_s5  ;;  %s1819_s9 = spop %1818 }
 0x270   : > { %s1428_s10 = smul.f32 %s1819_s9, %s2702_s7 }
 0x271   : > { %s1429_s11 = smul.f32 %s2705_s8, %s2705_s8  ;;  %s1450_s27 = ssub.f32 0.0, %s2705_s8 }
 0x272   : > { %s1941_s8 = scalar_lea.hbm %s2794_s3, 64 }
 0x273   : > { %s1430_s17 = ssub.f32 %s1428_s10, %s1429_s11 }
 0x275   : > { %s1431_s20 = smax.f32 %s1996_s19, %s1430_s17 }
 0x276   : > { %s1432_s22 = sadd.f32 1e-05, %s1431_s20 }
 0x278   : > { %v1433_v7 = vstv %s1432_s22 }
 0x279   : > { %1887 = vrsqrt.f32 %v1433_v7  ;;  %vm1440_vm5 = vweird.f32 %v1433_v7 }
 0x27f   : > { %v1888_v4 = vpop.eup %1887 }
 0x280   : > { %v1435_v18 = vmul.f32 %v1888_v4, %v1433_v7  ;;  %vm1441_vm4 = vweird.f32 %v1888_v4 }
 0x281   : > { %vm1442_vm6 = vmor %vm1440_vm5, %vm1441_vm4 }
 0x282   : > { %v1436_v15 = vmul.f32 %v1888_v4, %v1435_v18 }
 0x284   : > { %v1437_v22 = vmul.f32 0.5, %v1436_v15 }
 0x286   : > { %v1438_v6 = vsub.f32 1.5, %v1437_v22 }
 0x288   : > { %v1439_v0 = vmul.f32 %v1888_v4, %v1438_v6 }
 0x28a   : > { %v1460_v11 = vpop.xlane.xlu2 %1459  ;;  %v1443_v5 = vsel %vm1442_vm6, %v1888_v4, %v1439_v0 }
 0x28b   : > { %v1461_v31 = vrot.slane %v1460_v11, 4  ;;  %1820 = vpush %v1443_v5 }
 0x28d   : > { %v1462_v17 = vadd.f32 %v1461_v31, %v1460_v11 }
 0x28f   : > { %v1463_v19 = vrot.slane %v1462_v17, 2 }
 0x291   : > { %v1464_v12 = vadd.f32 %v1463_v19, %v1462_v17 }
 0x292   : > { %v1483_v47 = vpop.xlane.xlu0 %1482 }
 0x293   : > { %v1484_v38 = vrot.slane %v1483_v47, 4  ;;  %v1465_v62 = vrot.slane %v1464_v12, 1 }
 0x295   : > { %v1485_v23 = vadd.f32 %v1484_v38, %v1483_v47  ;;  %v1466_v33 = vadd.f32 %v1465_v62, %v1464_v12 }
 0x297   : > { %v1486_v3 = vrot.slane %v1485_v23, 2  ;;  %1822 = vpush %v1466_v33 }
 0x299   : > { %v1487_v27 = vadd.f32 %v1486_v3, %v1485_v23 }
 0x29b   : > { %v1488_v59 = vrot.slane %v1487_v27, 1 }
 0x29d   : > { %v1489_v48 = vadd.f32 %v1488_v59, %v1487_v27 }
 0x29f   : > { %1824 = vpush %v1489_v48 }
 0x2bc   : > { %s2712_s26 = spop %1820 }
 0x2bd   : > { %s2715_s28 = smul.f32 %s2712_s26, %s1450_s27  ;;  %v1448_v40 = vstv %s2712_s26  ;;  %s1807_s26 = sshll.u32 %s2040_s16, 5 }
 0x2be   : > { %v1449_v26 = vsel %vm1446_vm12, %v1448_v40, 0.0 }
 0x2bf   : > { %v1452_v45 = vstv %s2715_s28 }
 0x2c0   : > { %v1453_v50 = vsel %vm1446_vm12, %v1452_v45, 0.0 }
 0x2c8   : > { %s1823_s4 = spop %1822 }
 0x2c9   : > { %s2718_s6 = smul.f32 %s1823_s4, %s2702_s7 }
 0x2cb   : > { %s1500_s23 = smul.f32 %s2718_s6, %s2718_s6 }
 0x2d0   : > { %s1825_s5 = spop %1824 }
 0x2d1   : > { %s1499_s9 = smul.f32 %s1825_s5, %s2702_s7  ;;  %s1521_s7 = ssub.f32 0.0, %s2718_s6 }
 0x2d2   : > { %s1598_s6 = scalar_lea.hbm %s2794_s3, %s1807_s26 }
 0x2d3   : > { %s1501_s10 = ssub.f32 %s1499_s9, %s1500_s23  ;;  %s190_s23 = scalar_lea.vmem [#allocation6], %s1682_s30 }
 0x2d4   : > { %s1599_s5 = sshll.u32 %s190_s23, 4  ;;  %s1601_s9 = sshll.u32 %s1598_s6, 4  ;;  %s1600_s5 = int_to_ptr.vmem [resolvable:$true] %s1599_s5  ;;  %s1602_s9 = int_to_ptr.hbm [resolvable:$true] %s1601_s9 }
 0x2d5   : > { %s1502_s11 = smax.f32 %s1996_s19, %s1501_s10  ;;  %s1587_s30 = scalar_lea.sflag [#allocation5], %s2105_s29 }
 0x2d6   : > { %s1503_s17 = sadd.f32 1e-05, %s1502_s11  ;;  %s1935_s10 = sshra.s32 %s1602_s9, 4  ;;  %s1936_s10 = int_to_ptr.hbm [resolvable:$true] %s1935_s10 }
 0x2d7   : > { %s1937_s11 = scalar_lea.hbm %s1936_s10, 32  ;;  %p1942_p0 = scmp.lt.s32.totalorder %s1936_s10, %s2794_s3 }
 0x2d8   : > { %v1504_v20 = vstv %s1503_s17  ;;  %p1938_p6 = scmp.ne.s32.totalorder %s1936_s10, %s1937_s11  ;;  %p1943_p1 = scmp.lt.s32.totalorder %s1941_s8, %s1937_s11 }
 0x2d9   : > { %1889 = vrsqrt.f32 %v1504_v20  ;;  %vm1511_vm8 = vweird.f32 %v1504_v20 }
 0x2da   : > { %p1939_p9 = pnand %p1938_p6, %p2069_p11  ;;  %p1944_p3 = por %p1943_p1, %p1942_p0 }
 0x2dc   : > { %p1940_p13 = pneg %p1939_p9 }
 0x2de   : > { %p1945_p4 = pnand %p1944_p3, %p1940_p13 }
 0x2df   : > { %v1890_v53 = vpop.eup %1889 }
 0x2e0   : > { %v1506_v36 = vmul.f32 %v1890_v53, %v1504_v20  ;;  %vm1512_vm7 = vweird.f32 %v1890_v53 }
 0x2e1   : > { %vm1513_vm9 = vmor %vm1511_vm8, %vm1512_vm7 }
 0x2e2   : > { %v1507_v13 = vmul.f32 %v1890_v53, %v1506_v36 }
 0x2e4   : > { %v1508_v10 = vmul.f32 0.5, %v1507_v13 }
 0x2e6   : > { %v1509_v41 = vsub.f32 1.5, %v1508_v10 }
 0x2e8   : > { %v1510_v46 = vmul.f32 %v1890_v53, %v1509_v41 }
 0x2ea   : > { %v1514_v61 = vsel %vm1513_vm9, %v1890_v53, %v1510_v46 }
 0x2eb   : > { %1826 = vpush %v1514_v61 }
 0x31c   : > { %s1827_s20 = spop %1826 }
 0x31d   : > { %v1519_v49 = vstv %s1827_s20  ;;  %s1522_s22 = smul.f32 %s1827_s20, %s1521_s7 }
 0x31e   : > { %v1520_v1 = vsel %vm1518_vm13, %v1519_v49, %v1449_v26 }
 0x31f   : > { %v1523_v24 = vstv %s1522_s22  ;;  %v1525_v21 = vmul.f32 %v1520_v1, %v1334_v43 }
 0x320   : > { %v1524_v42 = vsel %vm1518_vm13, %v1523_v24, %v1453_v50 }
 0x321   : > { %v1526_v8 = vmul.f32 %v1524_v42, %v1334_v43  ;;  %v1528_v2 = vperm.slane %v1525_v21, 0 }
 0x323   : > { %v1527_v28 = vadd.f32 %v1526_v8, %v1335_v52  ;;  %v1529_v25 = vmul.f32 %v1528_v2, %v2639_v39  ;;  %v1530_v29 = vmul.f32 %v1528_v2, %v2642_v34  ;;  %v1531_v60 = vmul.f32 %v1528_v2, %v2645_v16 }
 0x324   : > { %v1532_v56 = vmul.f32 %v1528_v2, %v2659_v37  ;;  %v1533_v54 = vmul.f32 %v1528_v2, %v2668_v32  ;;  %v1534_v30 = vmul.f32 %v1528_v2, %v2676_v51  ;;  %v1535_v63 = vmul.f32 %v1528_v2, %v2684_v58 }
 0x325   : > { %v1537_v57 = vperm.slane %v1527_v28, 0  ;;  %v1536_v55 = vmul.f32 %v1528_v2, %v2695_v14 }
 0x327   : > { %v1538_v35 = vadd.f32 %v1537_v57, %v1529_v25  ;;  %v1539_v7 = vadd.f32 %v1537_v57, %v1530_v29  ;;  %v1540_v4 = vadd.f32 %v1537_v57, %v1531_v60  ;;  %v1541_v39 = vadd.f32 %v1537_v57, %v1532_v56 }
 0x328   : > { %v1542_v18 = vadd.f32 %v1537_v57, %v1533_v54  ;;  %v1543_v34 = vadd.f32 %v1537_v57, %v1534_v30  ;;  %v1544_v15 = vadd.f32 %v1537_v57, %v1535_v63  ;;  %v1545_v16 = vadd.f32 %v1537_v57, %v1536_v55 }
 0x329   : > { %vm1546_vm14 = vcmp.gt.f32.partialorder %v1538_v35, 0.0  ;;  %vm1547_vm15 = vcmp.gt.f32.partialorder %v1539_v7, 0.0  ;;  %vm1548_vm1 = vcmp.gt.f32.partialorder %v1540_v4, 0.0  ;;  %vm1549_vm2 = vcmp.gt.f32.partialorder %v1541_v39, 0.0 }
 0x32a   : > { %vm1550_vm3 = vcmp.gt.f32.partialorder %v1542_v18, 0.0  ;;  %vm1551_vm4 = vcmp.gt.f32.partialorder %v1543_v34, 0.0  ;;  %vm1552_vm5 = vcmp.gt.f32.partialorder %v1544_v15, 0.0  ;;  %v1554_v37 = vmul.f32 0.2, %v1538_v35 }
 0x32b   : > { %v1555_v32 = vmul.f32 0.2, %v1539_v7  ;;  %v1556_v51 = vmul.f32 0.2, %v1540_v4  ;;  %v1557_v58 = vmul.f32 0.2, %v1541_v39 }
 0x32c   : > { %v1558_v14 = vmul.f32 0.2, %v1542_v18  ;;  %v1559_v22 = vmul.f32 0.2, %v1543_v34  ;;  %v1560_v6 = vmul.f32 0.2, %v1544_v15  ;;  %v1562_v11 = vsel %vm1546_vm14, %v1538_v35, %v1554_v37 }
 0x32d   : > { %v1561_v0 = vmul.f32 0.2, %v1545_v16  ;;  %v1563_v5 = vsel %vm1547_vm15, %v1539_v7, %v1555_v32  ;;  %vm1553_vm6 = vcmp.gt.f32.partialorder %v1545_v16, 0.0  ;;  %v1564_v31 = vsel %vm1548_vm1, %v1540_v4, %v1556_v51 }
 0x32e   : > { %v1565_v17 = vsel %vm1549_vm2, %v1541_v39, %v1557_v58  ;;  %v1566_v19 = vsel %vm1550_vm3, %v1542_v18, %v1558_v14  ;;  %v1567_v12 = vsel %vm1551_vm4, %v1543_v34, %v1559_v22  ;;  %v1570_v47 = vpack.c.bf16 %v1562_v11, %v1562_v11 }
 0x32f   : > { %v1571_v38 = vpack.c.bf16 %v1563_v5, %v1563_v5  ;;  %v1568_v62 = vsel %vm1552_vm5, %v1544_v15, %v1560_v6  ;;  %v1572_v23 = vpack.c.bf16 %v1564_v31, %v1564_v31  ;;  %v1573_v33 = vpack.c.bf16 %v1565_v17, %v1565_v17 }
 0x330   : > { %v1569_v3 = vsel %vm1553_vm6, %v1545_v16, %v1561_v0  ;;  %v1574_v27 = vpack.c.bf16 %v1566_v19, %v1566_v19  ;;  %1578 = vst.msk [vmem:[%s190_s23] sm:$0xf] %vm200_vm0, %v1570_v47  ;;  %v1575_v59 = vpack.c.bf16 %v1567_v12, %v1567_v12  ;;  %v1576_v48 = vpack.c.bf16 %v1568_v62, %v1568_v62 }
 0x331   : > { %1579 = vst.msk [vmem:[%s190_s23 + $0x4] sm:$0xf] %vm200_vm0, %v1571_v38  ;;  %v1577_v20 = vpack.c.bf16 %v1569_v3, %v1569_v3 }
 0x332   : > { %1580 = vst.msk [vmem:[%s190_s23 + $0x8] sm:$0xf] %vm200_vm0, %v1572_v23 }
 0x333   : > { %1581 = vst.msk [vmem:[%s190_s23 + $0xc] sm:$0xf] %vm200_vm0, %v1573_v33 }
 0x334   : > { %1582 = vst.msk [vmem:[%s190_s23 + $0x10] sm:$0xf] %vm200_vm0, %v1574_v27 }
 0x335   : > { %1583 = vst.msk [vmem:[%s190_s23 + $0x14] sm:$0xf] %vm200_vm0, %v1575_v59 }
 0x336   : > { %1584 = vst.msk [vmem:[%s190_s23 + $0x18] sm:$0xf] %vm200_vm0, %v1576_v48 }
 0x337   : > { %1585 = vst.msk [vmem:[%s190_s23 + $0x1c] sm:$0xf] %vm200_vm0, %v1577_v20 }
 0x338   : > { %1948 = shalt.err (!%p1945_p4)
}
 0x339   : > { %s1997_s29 = smov 64   ;;  %s1998_s22 = smov 4  }
 0x33a   : > { %1830 = dma.vmem_to_hbm [thread:$0]  (%p2069_p11), %s1600_s5, 512, %s1602_s9, %s1587_s30, %s1997_s29, %s1997_s29, %s1998_s22  }
 0x33b PF: > { %s1616_s27 = sand.u32 1, %s1975_s12   ;;  %p2810_p7 = scmp.ge.s32.totalorder %s1987_s15, 2 }
 0x33c   : > { %s1617_s4 = scalar_lea.sflag [#allocation5], %s1616_s27 }
 0x33d   : > { %p1837_p5 = pnand %p2810_p7, %p2073_p12 }
 0x33f   : > { %p1838_p8 = pneg %p1837_p5 }
 0x341   : > { %1970 = dma.done.wait (%p1838_p8), %s1617_s4, 512  }
 0x342   : > { %1972 = vsyncadd (%p1838_p8), %s1617_s4, 4294966784  ;;  %p16_p10 = scmp.ge.s32.totalorder %s2044_s18, 4   ;;  %s2811_s12 = smov %s1979_s13 }
 0x343   : > { %s2812_s13 = smov %s1983_s14  ;;  %s2813_s14 = smov %s2056_s21 }
 0x344   : > { %s2814_s15 = smov %s2044_s18  ;;  %18 = sbr.rel (!%p16_p10) target bundleno = 5 (0x5), region = 82 }
 0x349   :  { %1623 = vsyncpa [#allocation4], 1 }
 0x34a   :  { %1625 = vsyncpa [#allocation4 + $0x1], 1 }
 0x34b   :  { %1626 = vsyncpa [#allocation5], 1 }
 0x34c   :  { %1628 = vsyncpa [#allocation5 + $0x1], 1 }

</bundles_post_ra>
